<compile_context>
chip_gen: v6e
topology: v6e:2x2x1
jax: 0.10.0
libtpu: 0.0.40
codegen_flags: <defaults>
</compile_context>

<pallas_src>
import functools

import jax
import jax.numpy as jnp
from jax.experimental import pallas as pl
from jax.experimental.pallas import tpu as pltpu

HIDDEN = 768
P_LEN = 4                  # args.prompt_len (cat of 4 stages, view(bsz, 4, 3840))
SPLIT = 2 * HIDDEN         # 1536 — size of each chunk of the 4*2*768 encoder output
NUM_LAYERS = 12            # number of gate heads / BERT layers
STAGE_CHANNELS = (256, 512, 1024, 2048)   # sum = 3840
FEAT_DIM = sum(STAGE_CHANNELS)            # 3840
CHUNK = FEAT_DIM // P_LEN                 # 960 channels per prompt row

# Largest kernel footprint (encoder_conv, block_n=3072, double buffered) is ~23 MiB,
# well under v7x's 64 MiB physical VMEM (v5e/v6e have 128 MiB).
_VMEM_LIMIT = 48 * 1024 * 1024


def _cparams(n_axes=1):
    return pltpu.CompilerParams(
        dimension_semantics=("parallel",) * n_axes,
        vmem_limit_bytes=_VMEM_LIMIT,
    )


# ----------------------------------------------------------------------------- kernels
def _linear_kernel(x_ref, w_ref, b_ref, o_ref):
    x = x_ref[...].astype(w_ref.dtype)          # in-kernel cast (free VPU slot)
    o_ref[...] = (jnp.dot(x, w_ref[...], preferred_element_type=jnp.float32)
                  + b_ref[...])


def pallas_linear(x, w, b):
    """y = x @ w + b.  x:(M,K) f32, w:(K,N) bf16, b:(1,N) f32.  Single grid step."""
    M, K = x.shape
    N = w.shape[1]
    return pl.pallas_call(
        _linear_kernel,
        out_shape=jax.ShapeDtypeStruct((M, N), jnp.float32),
        grid=(1,),
        in_specs=[
            pl.BlockSpec((M, K), lambda j: (0, 0)),
            pl.BlockSpec((K, N), lambda j: (0, 0)),
            pl.BlockSpec((1, N), lambda j: (0, 0)),
        ],
        out_specs=pl.BlockSpec((M, N), lambda j: (0, 0)),
        compiler_params=_cparams(1),
    )(x, w, b)


def _encoder_conv_kernel(x_ref, w1_ref, b1_ref, w2_ref, b2_ref, o_ref):
    # Fused: h = tanh(x @ w1 + b1); o = h @ w2_tile + b2_tile.
    # x/w1 blocks have constant indices -> fetched once, stay resident across N tiles.
    x = x_ref[...].astype(w1_ref.dtype)
    h = jnp.dot(x, w1_ref[...], preferred_element_type=jnp.float32) + b1_ref[...]
    h = jnp.tanh(h).astype(w2_ref.dtype)
    o_ref[...] = (jnp.dot(h, w2_ref[...], preferred_element_type=jnp.float32)
                  + b2_ref[...])


def encoder_conv(x, w1, b1, w2, b2, block_n=3072):
    """Fused Linear(3840,800)+Tanh+Linear(800,6144) on a (M,3840) batch of prompt rows."""
    M, K = x.shape
    H1 = w1.shape[1]
    N = w2.shape[1]
    if N % block_n != 0:
        block_n = N
    return pl.pallas_call(
        _encoder_conv_kernel,
        out_shape=jax.ShapeDtypeStruct((M, N), jnp.float32),
        grid=(N // block_n,),
        in_specs=[
            pl.BlockSpec((M, K), lambda j: (0, 0)),
            pl.BlockSpec((K, H1), lambda j: (0, 0)),
            pl.BlockSpec((1, H1), lambda j: (0, 0)),
            pl.BlockSpec((H1, block_n), lambda j: (0, j)),
            pl.BlockSpec((1, block_n), lambda j: (0, j)),
        ],
        out_specs=pl.BlockSpec((M, block_n), lambda j: (0, j)),
        compiler_params=_cparams(1),
    )(x, w1, b1, w2, b2)


def _text_encoder_kernel(x_ref, w_ref, b_ref, o_ref, *, bsz, seqlen):
    # Fused: Linear(768 -> 1536) + leaky_relu + softmax over the BATCH axis.
    # (PyTorch F.softmax with implicit dim on a 3-D tensor resolves to dim=0.)
    x = x_ref[...].astype(w_ref.dtype)
    y = jnp.dot(x, w_ref[...], preferred_element_type=jnp.float32) + b_ref[...]
    y = jnp.where(y >= 0.0, y, 0.01 * y)                     # leaky_relu
    # rows are b-major: row = b*seqlen + s  ->  softmax over b per (s, lane)
    chunks = [y[b * seqlen:(b + 1) * seqlen, :] for b in range(bsz)]
    m = chunks[0]
    for b in range(1, bsz):
        m = jnp.maximum(m, chunks[b])
    es = [jnp.exp(c - m) for c in chunks]
    denom = es[0]
    for b in range(1, bsz):
        denom = denom + es[b]
    o_ref[...] = jnp.concatenate([e / denom for e in es], axis=0)


def text_encoder(x, w, b, *, bsz, seqlen, block_n=768):
    """encoder_text + leaky_relu + dim-0 softmax, fused.  x:(B*S,768) -> (B*S,1536)."""
    M, K = x.shape
    N = w.shape[1]
    if N % block_n != 0:
        block_n = N
    return pl.pallas_call(
        functools.partial(_text_encoder_kernel, bsz=bsz, seqlen=seqlen),
        out_shape=jax.ShapeDtypeStruct((M, N), jnp.float32),
        grid=(N // block_n,),
        in_specs=[
            pl.BlockSpec((M, K), lambda j: (0, 0)),
            pl.BlockSpec((K, block_n), lambda j: (0, j)),
            pl.BlockSpec((1, block_n), lambda j: (0, j)),
        ],
        out_specs=pl.BlockSpec((M, block_n), lambda j: (0, j)),
        compiler_params=_cparams(1),
    )(x, w, b)


def _stage_pool_kernel(x_ref, o_ref, *, k):
    # x_ref block: (N, H, W, C) NHWC, whole batch; o_ref block: (N, 4, C), row = h*2+w.
    x = x_ref[...]
    inv = 1.0 / float(k * k)
    rows = []
    for i in range(2):
        for j in range(2):
            win = x[:, i * k:(i + 1) * k, j * k:(j + 1) * k, :]     # (N, k, k, C)
            s = jnp.sum(jnp.sum(win, axis=1), axis=1) * inv         # (N, C)
            rows.append(s[:, None, :])
    o_ref[...] = jnp.concatenate(rows, axis=1)                      # (N, 4, C)


def stage_avgpool_nhwc(x_nhwc):
    """AvgPool2d(kernel=H//2, stride=H//2) on NHWC maps -> (N, 4, C), batched, 1 step."""
    N, H, W, C = x_nhwc.shape
    k = H // 2
    return pl.pallas_call(
        functools.partial(_stage_pool_kernel, k=k),
        out_shape=jax.ShapeDtypeStruct((N, 4, C), jnp.float32),
        grid=(1,),
        in_specs=[pl.BlockSpec((N, H, W, C), lambda n: (0, 0, 0, 0))],
        out_specs=pl.BlockSpec((N, 4, C), lambda n: (0, 0, 0)),
        compiler_params=_cparams(1),
    )(x_nhwc)


def _gate_heads_kernel(enc_ref, gw_ref, gb_ref, o_ref):
    # Single step: all 12 gate heads, all (guid_set, batch) rows.
    #   enc_ref: (GB, P, 4*SPLIT) f32     encoder output, native layout
    #   gw_ref:  (P, SPLIT, 48)   bf16    packed gate weights, column = i*12 + l
    #   gb_ref:  (1, 48)          f32
    #   o_ref:   (12, GB, P, SPLIT) f32
    enc = enc_ref[...]
    gb_rows = enc.shape[0]
    splits = [enc[..., i * SPLIT:(i + 1) * SPLIT] for i in range(4)]   # 4 x (GB, P, SPLIT)
    ssum = (splits[0] + splits[1] + splits[2] + splits[3]) * 0.25       # (GB, P, SPLIT)

    # gate logits for all heads: logits[:, i*12+l] (contract over p and split lanes)
    acc = jnp.zeros((gb_rows, NUM_LAYERS * 4), jnp.float32)
    for p_i in range(P_LEN):
        acc = acc + jnp.dot(ssum[:, p_i, :].astype(gw_ref.dtype), gw_ref[p_i],
                            preferred_element_type=jnp.float32)
    logits = acc + gb_ref[...]                                          # (GB, 48)
    z = jnp.where(logits >= 0.0, logits, 0.01 * logits)                 # leaky_relu

    # grouped softmax over the 4 splits per head: contiguous (GB, 12) lane chunks
    chunks = [z[:, i * NUM_LAYERS:(i + 1) * NUM_LAYERS] for i in range(4)]
    m = jnp.maximum(jnp.maximum(chunks[0], chunks[1]),
                    jnp.maximum(chunks[2], chunks[3]))
    es = [jnp.exp(c - m) for c in chunks]
    denom = es[0] + es[1] + es[2] + es[3]
    gates = [e / denom for e in es]                                     # 4 x (GB, 12)

    # gated mixture per head: dense (GB, P, SPLIT) stores
    for l in range(NUM_LAYERS):
        kv = gates[0][:, l:l + 1][:, :, None] * splits[0]
        for i in range(1, 4):
            kv = kv + gates[i][:, l:l + 1][:, :, None] * splits[i]
        o_ref[l] = kv


def gate_heads(enc3, gates_w, gates_b):
    """enc3: (G*B, P_LEN, 4*SPLIT) -> (12, G*B, P_LEN, SPLIT) gated key/vals."""
    GB, P, D = enc3.shape
    return pl.pallas_call(
        _gate_heads_kernel,
        out_shape=jax.ShapeDtypeStruct((NUM_LAYERS, GB, P, SPLIT), jnp.float32),
        grid=(1,),
        in_specs=[
            pl.BlockSpec((GB, P, D), lambda i: (0, 0, 0)),
            pl.BlockSpec((P_LEN, SPLIT, NUM_LAYERS * 4), lambda i: (0, 0, 0)),
            pl.BlockSpec((1, NUM_LAYERS * 4), lambda i: (0, 0)),
        ],
        out_specs=pl.BlockSpec((NUM_LAYERS, GB, P, SPLIT), lambda i: (0, 0, 0, 0)),
        compiler_params=_cparams(1),
    )(enc3, gates_w, gates_b)


# ----------------------------------------------------------------------------- glue
def viterbi_decode(emissions, mask, transitions, start_trans, end_trans):
    """torchcrf-style Viterbi decode (plain JAX, fully unrolled; not a hot path).
    Exact for all-ones masks; masked steps pass scores/pointers through."""
    B, S, L = emissions.shape
    score0 = start_trans[None, :] + emissions[:, 0]                       # (B, L)

    def fwd(score, t):
        nxt = score[:, :, None] + transitions[None, :, :] + emissions[:, t][:, None, :]
        best_score = jnp.max(nxt, axis=1)
        best_idx = jnp.argmax(nxt, axis=1).astype(jnp.int32)              # (B, L)
        m = mask[:, t][:, None]
        new_score = jnp.where(m, best_score, score)
        hist = jnp.where(m, best_idx,
                         jnp.broadcast_to(jnp.arange(L, dtype=jnp.int32), (B, L)))
        return new_score, hist

    score, history = jax.lax.scan(fwd, score0, jnp.arange(1, S), unroll=True)
    score = score + end_trans[None, :]
    last_tag = jnp.argmax(score, axis=-1).astype(jnp.int32)               # (B,)

    def bwd(tag, hist_t):
        prev = jnp.take_along_axis(hist_t, tag[:, None], axis=1)[:, 0]
        return prev, prev

    _, rev_tags = jax.lax.scan(bwd, last_tag, history, reverse=True, unroll=True)
    tags = jnp.concatenate([rev_tags, last_tag[None, :]], axis=0)         # (S, B)
    return tags.T                                                         # (B, S)


def image_backbone_prompts(key, num_sets, bsz):
    """Synthesize per-stage SE-ResNet feature maps (TODO stand-in), Pallas-pool them and
    build the encoder_conv input rows in the NATIVE (spatial-major, channel-lane) order.
    The PyTorch (channel, spatial) interleave of each prompt row is absorbed by the
    offline row permutation of enc_w1 (see precast_params)."""
    # TODO(synk): SE-ResNet50 pretrained trunk not re-implemented; stage feature maps are
    # synthesized deterministically in NHWC; AvgPool2d runs in Pallas, one grid step per
    # stage, batched over all (main + aux) image sets.
    gb = num_sets * bsz
    pooled = []
    for i, c in enumerate(STAGE_CHANNELS):
        feat = jax.random.normal(jax.random.fold_in(key, i), (gb, 8, 8, c), jnp.float32)
        pooled.append(stage_avgpool_nhwc(feat))               # (GB, 4, C), row = h*2+w
    cat = jnp.concatenate(pooled, axis=-1)                    # (GB, 4_s, 3840_c)
    # prompt row p owns channels [p*960, (p+1)*960); native intra-row order j' = s*960 + c_rel
    x = cat.reshape(gb, 4, P_LEN, CHUNK)                      # (GB, s, p, 960)
    x = jnp.transpose(x, (0, 2, 1, 3))                        # (GB, p, s, 960)  (tiny)
    return x.reshape(gb * P_LEN, FEAT_DIM)                    # (GB*P, 3840)


def get_visual_prompt(pp, images, aux_imgs, seq_last_hidden_state, key):
    bsz = images.shape[0]
    num_aux = aux_imgs.shape[1]            # aux_imgs.permute([1,0,2,3,4]) ordering == g=1..
    G = 1 + num_aux

    # ---- SeresnetModel.forward (main + aux sets batched) ----
    x_rows = image_backbone_prompts(jax.random.fold_in(key, 0), G, bsz)  # (G*B*P, 3840)

    # ---- encoder_conv (fused Linear+Tanh+Linear, bf16 MXU, all guid sets in one call) ----
    enc = encoder_conv(x_rows, pp["enc_w1"], pp["enc_b1"], pp["enc_w2"], pp["enc_b2"])
    enc3 = enc.reshape(G * bsz, P_LEN, 4 * 2 * HIDDEN)                   # (G*B, 4, 6144)

    # ---- encoder_text + leaky_relu + dim-0 softmax, fused in one Pallas call ----
    B, S, H = seq_last_hidden_state.shape
    text_key_val = text_encoder(seq_last_hidden_state.reshape(-1, H),
                                pp["text_w"], pp["text_b"],
                                bsz=B, seqlen=S).reshape(B, S, 2 * H)

    # ---- gates: one kernel for all 12 heads (split-sum once, one packed logits matmul,
    #      grouped softmax, gated mixtures written densely) ----
    gated = gate_heads(enc3, pp["gates_w"], pp["gates_b"])               # (12, G*B, 4, 1536)
    gated = gated.reshape(NUM_LAYERS, G, bsz, P_LEN, SPLIT)
    gated = jnp.transpose(gated, (0, 2, 1, 3, 4)).reshape(
        NUM_LAYERS, bsz, G * P_LEN, SPLIT)                               # (12, B, 4*G, 1536)

    result = []
    for idx in range(NUM_LAYERS):
        key_val = jnp.concatenate([gated[idx], text_key_val], axis=1)    # (B, 4*G+S, 1536)
        k = key_val[..., :HIDDEN].reshape(bsz, 12, -1, 64)
        v = key_val[..., HIDDEN:].reshape(bsz, 12, -1, 64)
        result.append((k, v))
    return result


def cner_forward(pp, input_ids=None, attention_mask=None, token_type_ids=None,
                 labels=None, images=None, aux_imgs=None, seq_input_ids=None,
                 seq_token_type_ids=None, seq_attention_mask=None, *, rng_key):
    bsz, seq_len = input_ids.shape

    # TODO(synk): BertModel (pretrained) not implemented — deterministic synthetic
    # hidden states stand in for seq_output.last_hidden_state and
    # bert_output.last_hidden_state (past_key_values path is therefore not consumed).
    kb = jax.random.fold_in(rng_key, 1000)
    seq_last_hidden_state = jax.random.normal(jax.random.fold_in(kb, 0),
                                              (bsz, seq_len, HIDDEN), jnp.float32)
    prompt_guids = get_visual_prompt(pp, images, aux_imgs, seq_last_hidden_state, rng_key)

    # prompt_guids_mask / prompt_attention_mask only feed BERT (not implemented); skipped.
    sequence_output = jax.random.normal(jax.random.fold_in(kb, 1),
                                        (bsz, seq_len, HIDDEN), jnp.float32)

    # dropout(p=0.1): identity (eval-mode semantics)
    # fc: lane-dense padded output (num_labels -> 128), sliced back outside the kernel.
    em_pad = pallas_linear(sequence_output.reshape(-1, HIDDEN), pp["fc_w"], pp["fc_b"])
    emissions = em_pad[:, :pp["num_labels"]].reshape(bsz, seq_len, -1)

    logits = viterbi_decode(emissions, attention_mask.astype(bool),
                            pp["crf_transitions"], pp["crf_start"], pp["crf_end"])
    loss = None  # labels=None path (CRF NLL not exercised)
    return {"loss": loss, "logits": logits, "emissions": emissions,
            "prompt_guids": prompt_guids}


# ----------------------------------------------------------------------------- params
def init_params(key, num_labels):
    def lin(k, fan_in, fan_out, scale=0.02):
        kw, kbias = jax.random.split(k)
        return (scale * jax.random.normal(kw, (fan_in, fan_out), jnp.float32),
                scale * jax.random.normal(kbias, (fan_out,), jnp.float32))

    ks = jax.random.split(key, 8)
    p = {}
    p["enc_w1"], p["enc_b1"] = lin(ks[0], FEAT_DIM, 800)
    p["enc_w2"], p["enc_b2"] = lin(ks[1], 800, 4 * 2 * HIDDEN)
    p["text_w"], p["text_b"] = lin(ks[2], HIDDEN, 2 * HIDDEN)
    gw, gb = [], []
    for i in range(NUM_LAYERS):
        w, b = lin(jax.random.fold_in(ks[3], i), 4 * 2 * HIDDEN, 4)
        gw.append(w)
        gb.append(b)
    p["gates_w"] = jnp.stack(gw)                    # (12, 6144, 4)
    p["gates_b"] = jnp.stack(gb)                    # (12, 4)
    p["fc_w"], p["fc_b"] = lin(ks[4], HIDDEN, num_labels)
    p["crf_transitions"] = 0.1 * jax.random.normal(ks[5], (num_labels, num_labels), jnp.float32)
    p["crf_start"] = 0.1 * jax.random.normal(ks[6], (num_labels,), jnp.float32)
    p["crf_end"] = 0.1 * jax.random.normal(ks[7], (num_labels,), jnp.float32)
    return p


def precast_params(p, num_labels):
    """One-time pre-pack: bf16 MXU weights, (1,N) f32 biases, lane-dense padded FC,
    enc_w1 row-permuted to the native pooled layout, gate heads packed into (4,1536,48)."""
    pp = {"num_labels": num_labels}

    # enc_w1 row permutation: native column j' = s*960 + c_rel  <->  torch row c_rel*4 + s
    j = jnp.arange(FEAT_DIM)
    perm = (j % CHUNK) * 4 + (j // CHUNK)
    pp["enc_w1"] = p["enc_w1"][perm, :].astype(jnp.bfloat16)
    pp["enc_b1"] = p["enc_b1"].reshape(1, -1).astype(jnp.float32)
    pp["enc_w2"] = p["enc_w2"].astype(jnp.bfloat16)
    pp["enc_b2"] = p["enc_b2"].reshape(1, -1).astype(jnp.float32)
    pp["text_w"] = p["text_w"].astype(jnp.bfloat16)
    pp["text_b"] = p["text_b"].reshape(1, -1).astype(jnp.float32)

    # gate heads packed: gw[p, h, i*12 + l] = gates_w[l, p*1536 + h, i]
    gw = p["gates_w"].reshape(NUM_LAYERS, P_LEN, SPLIT, 4)       # (l, p, h, i)
    gw = jnp.transpose(gw, (1, 2, 3, 0))                         # (p, h, i, l)
    pp["gates_w"] = gw.reshape(P_LEN, SPLIT, 4 * NUM_LAYERS).astype(jnp.bfloat16)
    gb = jnp.transpose(p["gates_b"], (1, 0))                     # (i, l)
    pp["gates_b"] = gb.reshape(1, 4 * NUM_LAYERS).astype(jnp.float32)

    npad = max(128, ((num_labels + 127) // 128) * 128)
    pp["fc_w"] = jnp.pad(p["fc_w"], ((0, 0), (0, npad - num_labels))).astype(jnp.bfloat16)
    pp["fc_b"] = jnp.pad(p["fc_b"], (0, npad - num_labels)).reshape(1, -1).astype(jnp.float32)

    pp["crf_transitions"] = p["crf_transitions"]
    pp["crf_start"] = p["crf_start"]
    pp["crf_end"] = p["crf_end"]
    return pp


if __name__ == "__main__":
    key = jax.random.PRNGKey(0)
    bsz, seq_len, num_aux, num_labels = 2, 8, 2, 9

    params = init_params(jax.random.fold_in(key, 1), num_labels)
    pp = precast_params(params, num_labels)              # hoisted out of the hot path
    jax.block_until_ready([v for v in pp.values() if isinstance(v, jnp.ndarray)])

    images = jax.random.normal(jax.random.fold_in(key, 2), (bsz, 3, 32, 32), jnp.float32)
    aux_imgs = jax.random.normal(jax.random.fold_in(key, 3), (bsz, num_aux, 3, 32, 32), jnp.float32)
    input_ids = jax.random.randint(jax.random.fold_in(key, 4), (bsz, seq_len), 0, 1000)
    attention_mask = jnp.ones((bsz, seq_len), jnp.int32)
    token_type_ids = jnp.zeros((bsz, seq_len), jnp.int32)

    out = cner_forward(pp,
                       input_ids=input_ids,
                       attention_mask=attention_mask,
                       token_type_ids=token_type_ids,
                       labels=None,
                       images=images,
                       aux_imgs=aux_imgs,
                       seq_input_ids=input_ids,
                       seq_token_type_ids=token_type_ids,
                       seq_attention_mask=attention_mask,
                       rng_key=jax.random.fold_in(key, 5))
    jax.block_until_ready(out)
    print("KERNEL_OK")
</pallas_src>

<mosaic_0001>
module attributes {stable_mosaic.version = 11 : i64} {
  func.func @_stage_pool_kernel(%arg0: i32, %arg1: memref<6x8x8x256xf32, #tpu.memory_space<vmem>>, %arg2: memref<6x4x256xf32, #tpu.memory_space<vmem>>) attributes {dimension_semantics = [#tpu.dimension_semantics<parallel>], iteration_bounds = array<i64: 1>, scalar_prefetch = 0 : i64, scratch_operands = 0 : i64, tpu.core_type = #tpu.core_type<tc>, window_params = [{pipeline_mode = #tpu.pipeline_mode<synchronous>, transform_indices = @transform_0, window_bounds = array<i64: 6, 8, 8, 256>}, {pipeline_mode = #tpu.pipeline_mode<synchronous>, transform_indices = @transform_1, window_bounds = array<i64: 6, 4, 256>}]} {
    %c0 = arith.constant 0 : index
    %c0_0 = arith.constant 0 : index
    %c0_1 = arith.constant 0 : index
    %c0_2 = arith.constant 0 : index
    %0 = vector.load %arg1[%c0, %c0_0, %c0_1, %c0_2] : memref<6x8x8x256xf32, #tpu.memory_space<vmem>>, vector<6x8x8x256xf32>
    %1 = vector.extract_strided_slice %0 {offsets = [0, 0, 0, 0], sizes = [6, 4, 4, 256], strides = [1, 1, 1, 1]} : vector<6x8x8x256xf32> to vector<6x4x4x256xf32>
    %cst = arith.constant dense<0.000000e+00> : vector<6x4x256xf32>
    %2 = vector.multi_reduction <add>, %1, %cst [1] : vector<6x4x4x256xf32> to vector<6x4x256xf32>
    %cst_3 = arith.constant dense<0.000000e+00> : vector<6x256xf32>
    %3 = vector.multi_reduction <add>, %2, %cst_3 [1] : vector<6x4x256xf32> to vector<6x256xf32>
    %cst_4 = arith.constant 6.250000e-02 : f32
    %4 = vector.broadcast %cst_4 : f32 to vector<6x256xf32>
    %5 = arith.mulf %3, %4 : vector<6x256xf32>
    %6 = vector.shape_cast %5 : vector<6x256xf32> to vector<6x1x256xf32>
    %7 = vector.extract_strided_slice %0 {offsets = [0, 0, 4, 0], sizes = [6, 4, 4, 256], strides = [1, 1, 1, 1]} : vector<6x8x8x256xf32> to vector<6x4x4x256xf32>
    %cst_5 = arith.constant dense<0.000000e+00> : vector<6x4x256xf32>
    %8 = vector.multi_reduction <add>, %7, %cst_5 [1] : vector<6x4x4x256xf32> to vector<6x4x256xf32>
    %cst_6 = arith.constant dense<0.000000e+00> : vector<6x256xf32>
    %9 = vector.multi_reduction <add>, %8, %cst_6 [1] : vector<6x4x256xf32> to vector<6x256xf32>
    %cst_7 = arith.constant 6.250000e-02 : f32
    %10 = vector.broadcast %cst_7 : f32 to vector<6x256xf32>
    %11 = arith.mulf %9, %10 : vector<6x256xf32>
    %12 = vector.shape_cast %11 : vector<6x256xf32> to vector<6x1x256xf32>
    %13 = vector.extract_strided_slice %0 {offsets = [0, 4, 0, 0], sizes = [6, 4, 4, 256], strides = [1, 1, 1, 1]} : vector<6x8x8x256xf32> to vector<6x4x4x256xf32>
    %cst_8 = arith.constant dense<0.000000e+00> : vector<6x4x256xf32>
    %14 = vector.multi_reduction <add>, %13, %cst_8 [1] : vector<6x4x4x256xf32> to vector<6x4x256xf32>
    %cst_9 = arith.constant dense<0.000000e+00> : vector<6x256xf32>
    %15 = vector.multi_reduction <add>, %14, %cst_9 [1] : vector<6x4x256xf32> to vector<6x256xf32>
    %cst_10 = arith.constant 6.250000e-02 : f32
    %16 = vector.broadcast %cst_10 : f32 to vector<6x256xf32>
    %17 = arith.mulf %15, %16 : vector<6x256xf32>
    %18 = vector.shape_cast %17 : vector<6x256xf32> to vector<6x1x256xf32>
    %19 = vector.extract_strided_slice %0 {offsets = [0, 4, 4, 0], sizes = [6, 4, 4, 256], strides = [1, 1, 1, 1]} : vector<6x8x8x256xf32> to vector<6x4x4x256xf32>
    %cst_11 = arith.constant dense<0.000000e+00> : vector<6x4x256xf32>
    %20 = vector.multi_reduction <add>, %19, %cst_11 [1] : vector<6x4x4x256xf32> to vector<6x4x256xf32>
    %cst_12 = arith.constant dense<0.000000e+00> : vector<6x256xf32>
    %21 = vector.multi_reduction <add>, %20, %cst_12 [1] : vector<6x4x256xf32> to vector<6x256xf32>
    %cst_13 = arith.constant 6.250000e-02 : f32
    %22 = vector.broadcast %cst_13 : f32 to vector<6x256xf32>
    %23 = arith.mulf %21, %22 : vector<6x256xf32>
    %24 = vector.shape_cast %23 : vector<6x256xf32> to vector<6x1x256xf32>
    %25 = tpu.concatenate %6, %12, %18, %24 in 1 : vector<6x1x256xf32>, vector<6x1x256xf32>, vector<6x1x256xf32>, vector<6x1x256xf32> -> vector<6x4x256xf32>
    %c0_14 = arith.constant 0 : index
    %c0_15 = arith.constant 0 : index
    %c0_16 = arith.constant 0 : index
    %26 = vector.load %arg2[%c0_14, %c0_15, %c0_16] : memref<6x4x256xf32, #tpu.memory_space<vmem>>, vector<6x4x256xf32>
    tpu.vector_store %arg2[%c0_14, %c0_15, %c0_16], %25 {strides = array<i32>} : memref<6x4x256xf32, #tpu.memory_space<vmem>>, vector<6x4x256xf32>,
    return
  }
  func.func @transform_0(%arg0: i32) -> (i32, i32, i32, i32) {
    %c0_i32 = arith.constant 0 : i32
    %c0_i32_0 = arith.constant 0 : i32
    %c0_i32_1 = arith.constant 0 : i32
    %c0_i32_2 = arith.constant 0 : i32
    %c0_i32_3 = arith.constant 0 : i32
    return %c0_i32, %c0_i32_0, %c0_i32_1, %c0_i32_2 : i32, i32, i32, i32
  }
  func.func @transform_1(%arg0: i32) -> (i32, i32, i32) {
    %c0_i32 = arith.constant 0 : i32
    %c0_i32_0 = arith.constant 0 : i32
    %c0_i32_1 = arith.constant 0 : i32
    %c0_i32_2 = arith.constant 0 : i32
    return %c0_i32, %c0_i32_0, %c0_i32_1 : i32, i32, i32
  }
}

</mosaic_0001>

<bundles_post_ra>
// kernel: tpu_custom_call.1
= control target key start
LH: loop header
LB: loop body
LE: loop exit
PB: predicated region body
PF: predicated region fallthrough
CT: control target
= control target key end

     0   :  { %6 = vsyncpa [#allocation3], 0  ;;  %s1871_s0 = inlined_call_operand.hbm [shape: f32[6,8,8,256], index: 0, kind: input, shape index: {}]   ;;  %s1872_s1 = inlined_call_operand.hbm [shape: f32[6,4,256], index: 1, kind: output, shape index: {}]  }
   0x1   :  { %7 = vsyncpa [#allocation4], 0  ;;  %s1049_s6 = smov [#allocation2]  }
   0x2   :  { %s13_s7 = sshll.u32 %s1049_s6, 4  ;;  %s14_s7 = int_to_ptr.vmem [resolvable:$true] %s13_s7 }
   0x3   :  { %s1013_s8 = scalar_lea.vmem %s14_s7, 12288  ;;  %p1018_p1 = scmp.lt.s32.totalorder %s14_s7, %s14_s7 }
   0x4   :  { %p1014_p0 = scmp.ne.s32.totalorder %s14_s7, %s1013_s8  ;;  %p1019_p2 = scmp.lt.s32.totalorder %s1013_s8, %s1013_s8 }
   0x6   :  { %p1020_p3 = por %p1019_p2, %p1018_p1 }
   0x8   :  { %p1021_p4 = pnand %p1020_p3, %p1014_p0 }
   0xa   :  { %1024 = shalt.err (!%p1021_p4)
}
   0xb   :  { %s1050_s9 = smov 256   ;;  %s1051_s10 = smov 16  }
   0xc   :  { %19 = dma.hbm_to_vmem [thread:$0]  %s1871_s0, 12288, %s14_s7, [#allocation3], %s1050_s9, %s1050_s9, %s1051_s10  }
   0xd   :  { %1045 = dma.done.wait [#allocation3], 12288  }
   0xe   :  { %1046 = vsyncadd [#allocation3], 4294955008  ;;  %vm119_vm0 = vcmask 1043456   ;;  %v23_v0 = vld [vmem:[#allocation2] sm:$0xff]  ;;  %v24_v1 = vld [vmem:[#allocation2 + $0x8] sm:$0xff]  ;;  %vm300_vm1 = vcmask 1047556  }
   0xf   :  { %v25_v2 = vld [vmem:[#allocation2 + $0x10] sm:$0xff]  ;;  %v26_v3 = vld [vmem:[#allocation2 + $0x18] sm:$0xff]  ;;  %v27_v4 = vld [vmem:[#allocation2 + $0x20] sm:$0xff]  ;;  %v120_v6 = vsel %vm119_vm0, %v23_v0, 0.0  ;;  %v127_v8 = vsel %vm119_vm0, %v24_v1, 0.0  ;;  %v301_v17 = vsel %vm300_vm1, %v23_v0, 0.0 }
  0x10   :  { %v28_v5 = vld [vmem:[#allocation2 + $0x28] sm:$0xff]  ;;  %v121_v7 = vsel %vm119_vm0, %v25_v2, 0.0  ;;  %v29_v9 = vld [vmem:[#allocation2 + $0x30] sm:$0xff]  ;;  %v123_v11 = vsel %vm119_vm0, %v27_v4, 0.0  ;;  %v128_v12 = vsel %vm119_vm0, %v26_v3, 0.0  ;;  %v1074_v14 = vld [vmem:[#allocation2 + $0x38] sm:$0xff] }
  0x11   :  { %v122_v10 = vadd.f32 %v121_v7, %v120_v6  ;;  %v130_v13 = vsel %vm119_vm0, %v28_v5, 0.0  ;;  %v125_v15 = vsel %vm119_vm0, %v29_v9, 0.0  ;;  %v129_v16 = vadd.f32 %v128_v12, %v127_v8  ;;  %v1082_v22 = vld [vmem:[#allocation2 + $0x80] sm:$0xff]  ;;  %v1084_v23 = vld [vmem:[#allocation2 + $0x88] sm:$0xff]  ;;  %v1088_v28 = vld [vmem:[#allocation2 + $0x90] sm:$0xff]  ;;  %s1052_s0 = smov [#allocation5]  }
  0x12   :  { %v132_v19 = vsel %vm119_vm0, %v1074_v14, 0.0  ;;  %v302_v20 = vsel %vm300_vm1, %v25_v2, 0.0  ;;  %v304_v21 = vsel %vm300_vm1, %v27_v4, 0.0  ;;  %v306_v26 = vsel %vm300_vm1, %v29_v9, 0.0  ;;  %v1090_v29 = vld [vmem:[#allocation2 + $0x98] sm:$0xff]  ;;  %v1092_v30 = vld [vmem:[#allocation2 + $0xa0] sm:$0xff] }
  0x13   :  { %v124_v18 = vadd.f32 %v123_v11, %v122_v10  ;;  %v131_v24 = vadd.f32 %v130_v13, %v129_v16  ;;  %v303_v25 = vadd.f32 %v302_v20, %v301_v17  ;;  %v308_v27 = vsel %vm300_vm1, %v24_v1, 0.0  ;;  %v1099_v35 = vld [vmem:[#allocation2 + $0xa8] sm:$0xff]  ;;  %v1101_v36 = vld [vmem:[#allocation2 + $0xb0] sm:$0xff]  ;;  %v1109_v41 = vld [vmem:[#allocation2 + $0xb8] sm:$0xff]  ;;  %s987_s13 = sshll.u32 %s1052_s0, 4  ;;  %s988_s13 = int_to_ptr.vmem [resolvable:$true] %s987_s13 }
  0x14   :  { %v134_v32 = vsel %vm119_vm0, %v1082_v22, 0.0  ;;  %v141_v33 = vsel %vm119_vm0, %v1084_v23, 0.0  ;;  %v309_v34 = vsel %vm300_vm1, %v26_v3, 0.0  ;;  %v135_v38 = vsel %vm119_vm0, %v1088_v28, 0.0  ;;  %v1119_v50 = vld [vmem:[#allocation2 + $0x100] sm:$0xff]  ;;  %v1123_v55 = vld [vmem:[#allocation2 + $0x108] sm:$0xff]  ;;  %p1030_p6 = scmp.lt.s32.totalorder %s988_s13, %s988_s13 }
  0x15   :  { %v126_v31 = vadd.f32 %v125_v15, %v124_v18  ;;  %v133_v37 = vadd.f32 %v132_v19, %v131_v24  ;;  %v137_v39 = vsel %vm119_vm0, %v1092_v30, 0.0  ;;  %v142_v40 = vsel %vm119_vm0, %v1090_v29, 0.0  ;;  %v1125_v56 = vld [vmem:[#allocation2 + $0x110] sm:$0xff]  ;;  %v1134_v61 = vld [vmem:[#allocation2 + $0x118] sm:$0xff]  ;;  %v1136_v62 = vld [vmem:[#allocation2 + $0x120] sm:$0xff]  ;;  %s1025_s14 = scalar_lea.vmem %s988_s13, 768 }
  0x16   :  { %v136_v42 = vadd.f32 %v135_v38, %v134_v32  ;;  %v139_v43 = vsel %vm119_vm0, %v1101_v36, 0.0  ;;  %v143_v44 = vadd.f32 %v142_v40, %v141_v33  ;;  %v144_v45 = vsel %vm119_vm0, %v1099_v35, 0.0  ;;  %v1138_v63 = vld [vmem:[#allocation2 + $0x130] sm:$0xff]  ;;  %v1144_v4 = vld [vmem:[#allocation2 + $0x128] sm:$0xff]  ;;  %v1146_v6 = vld [vmem:[#allocation2 + $0x138] sm:$0xff]  ;;  %p1026_p5 = scmp.ne.s32.totalorder %s988_s13, %s1025_s14  ;;  %p1031_p7 = scmp.lt.s32.totalorder %s1025_s14, %s1025_s14 }
  0x17   :  { %v146_v46 = vsel %vm119_vm0, %v1109_v41, 0.0  ;;  %v204_v47 = vsel %vm119_vm0, %v126_v31, 0.0  ;;  %v211_v48 = vsel %vm119_vm0, %v133_v37, 0.0  ;;  %v305_v49 = vadd.f32 %v304_v21, %v303_v25  ;;  %v1160_v19 = vld [vmem:[#allocation2 + $0x180] sm:$0xff]  ;;  %v1162_v20 = vld [vmem:[#allocation2 + $0x188] sm:$0xff]  ;;  %v1164_v21 = vld [vmem:[#allocation2 + $0x190] sm:$0xff] }
  0x18   :  { %v138_v51 = vadd.f32 %v137_v39, %v136_v42  ;;  %v145_v52 = vadd.f32 %v144_v45, %v143_v44  ;;  %v205_v53 = vrot.slane %v204_v47, 4  ;;  %v1121_v54 = vadd.f32 %v309_v34, %v308_v27  ;;  %v1166_v31 = vld [vmem:[#allocation2 + $0x198] sm:$0xff]  ;;  %v1168_v32 = vld [vmem:[#allocation2 + $0x1a0] sm:$0xff]  ;;  %v1176_v39 = vld [vmem:[#allocation2 + $0x1a8] sm:$0xff]  ;;  %p1032_p8 = por %p1031_p7, %p1030_p6 }
  0x19   :  { %v148_v57 = vsel %vm119_vm0, %v1119_v50, 0.0  ;;  %v212_v58 = vrot.slane %v211_v48, 4  ;;  %v1129_v59 = vadd.f32 %v306_v26, %v305_v49  ;;  %v1132_v60 = vsel %vm300_vm1, %v28_v5, 0.0  ;;  %v1178_v40 = vld [vmem:[#allocation2 + $0x1b0] sm:$0xff] }
  0x1a   :  { %v140_v0 = vadd.f32 %v139_v43, %v138_v51  ;;  %v147_v1 = vadd.f32 %v146_v46, %v145_v52  ;;  %v149_v2 = vsel %vm119_vm0, %v1125_v56, 0.0  ;;  %v155_v3 = vsel %vm119_vm0, %v1123_v55, 0.0  ;;  %v1184_v46 = vld [vmem:[#allocation2 + $0x1b8] sm:$0xff]  ;;  %p1033_p9 = pnand %p1032_p8, %p1026_p5 }
  0x1b   :  { %1912 = vst [vmem:[#allocation8_spill] sm:$0xff] %v1129_v59  ;;  %v150_v5 = vadd.f32 %v149_v2, %v148_v57  ;;  %v151_v7 = vsel %vm119_vm0, %v1136_v62, 0.0  ;;  %v153_v8 = vsel %vm119_vm0, %v1138_v63, 0.0  ;;  %v156_v9 = vsel %vm119_vm0, %v1134_v61, 0.0  ;;  %1913 = vst [vmem:[#allocation9_spill] sm:$0xff] %v1184_v46 }
  0x1c   :  { %v157_v10 = vadd.f32 %v156_v9, %v155_v3  ;;  %v158_v11 = vsel %vm119_vm0, %v1144_v4, 0.0  ;;  %v160_v12 = vsel %vm119_vm0, %v1146_v6, 0.0  ;;  %v206_v13 = vadd.f32 %v205_v53, %v204_v47  ;;  %v1206_v9 = vld [vmem:[#allocation2 + $0x220] sm:$0xff] }
  0x1d   :  { %v152_v15 = vadd.f32 %v151_v7, %v150_v5  ;;  %v213_v16 = vadd.f32 %v212_v58, %v211_v48  ;;  %v218_v17 = vsel %vm119_vm0, %v140_v0, 0.0  ;;  %v225_v18 = vsel %vm119_vm0, %v147_v1, 0.0  ;;  %v1196_v0 = vld [vmem:[#allocation2 + $0x200] sm:$0xff]  ;;  %v1198_v1 = vld [vmem:[#allocation2 + $0x208] sm:$0xff]  ;;  %1918 = vst [vmem:[#allocation14_spill] sm:$0xff] %v1206_v9 }
  0x1e   :  { %v159_v24 = vadd.f32 %v158_v11, %v157_v10  ;;  %v207_v25 = vrot.slane %v206_v13, 2  ;;  %v219_v26 = vrot.slane %v218_v17, 4  ;;  %v226_v27 = vrot.slane %v225_v18, 4  ;;  %1914 = vst [vmem:[#allocation10_spill] sm:$0xff] %v1196_v0  ;;  %1915 = vst [vmem:[#allocation11_spill] sm:$0xff] %v1198_v1 }
  0x1f   :  { %v154_v33 = vadd.f32 %v153_v8, %v152_v15  ;;  %v162_v34 = vsel %vm119_vm0, %v1160_v19, 0.0  ;;  %v163_v37 = vsel %vm119_vm0, %v1164_v21, 0.0  ;;  %v169_v38 = vsel %vm119_vm0, %v1162_v20, 0.0  ;;  %v1202_v8 = vld [vmem:[#allocation2 + $0x210] sm:$0xff]  ;;  %v1212_v15 = vld [vmem:[#allocation2 + $0x228] sm:$0xff] }
  0x20   :  { %v161_v42 = vadd.f32 %v160_v12, %v159_v24  ;;  %v164_v43 = vadd.f32 %v163_v37, %v162_v34  ;;  %v165_v44 = vsel %vm119_vm0, %v1168_v32, 0.0  ;;  %v170_v45 = vsel %vm119_vm0, %v1166_v31, 0.0  ;;  %1916 = vst [vmem:[#allocation12_spill] sm:$0xff] %v1202_v8  ;;  %1919 = vst [vmem:[#allocation15_spill] sm:$0xff] %v1212_v15  ;;  %v1222_v34 = vld [vmem:[#allocation2 + $0x238] sm:$0xff] }
  0x21   :  { %v167_v47 = vsel %vm119_vm0, %v1178_v40, 0.0  ;;  %v171_v48 = vadd.f32 %v170_v45, %v169_v38  ;;  %v172_v49 = vsel %vm119_vm0, %v1176_v39, 0.0  ;;  %v1192_v51 = vsel %vm300_vm1, %v1074_v14, 0.0  ;;  %v1204_v14 = vld [vmem:[#allocation2 + $0x218] sm:$0xff]  ;;  %1921 = vst [vmem:[#allocation17_spill] sm:$0xff] %v1222_v34 }
  0x22   :  { %v166_v52 = vadd.f32 %v165_v44, %v164_v43  ;;  %v174_v53 = vsel %vm119_vm0, %v1184_v46, 0.0  ;;  %v208_v57 = vadd.f32 %v207_v25, %v206_v13  ;;  %v214_v58 = vrot.slane %v213_v16, 2  ;;  %1917 = vst [vmem:[#allocation13_spill] sm:$0xff] %v1204_v14 }
  0x23   :  { %v173_v2 = vadd.f32 %v172_v49, %v171_v48  ;;  %v220_v3 = vadd.f32 %v219_v26, %v218_v17  ;;  %v232_v5 = vsel %vm119_vm0, %v154_v33, 0.0  ;;  %v239_v7 = vsel %vm119_vm0, %v161_v42, 0.0  ;;  %v1220_v33 = vld [vmem:[#allocation2 + $0x230] sm:$0xff] }
  0x24   :  { %v176_v10 = vsel %vm119_vm0, %v1196_v0, 0.0  ;;  %v183_v11 = vsel %vm119_vm0, %v1198_v1, 0.0  ;;  %v209_v12 = vrot.slane %v208_v57, 1  ;;  %v227_v13 = vadd.f32 %v226_v27, %v225_v18  ;;  %1920 = vst [vmem:[#allocation16_spill] sm:$0xff] %v1220_v33 }
  0x25   :  { %v168_v17 = vadd.f32 %v167_v47, %v166_v52  ;;  %v177_v24 = vsel %vm119_vm0, %v1202_v8, 0.0  ;;  %v179_v25 = vsel %vm119_vm0, %v1206_v9, 0.0  ;;  %v184_v26 = vsel %vm119_vm0, %v1204_v14, 0.0  ;;  %v1230_v47 = vld [vmem:[#allocation2 + $0x280] sm:$0xff] }
  0x26   :  { %v175_v37 = vadd.f32 %v174_v53, %v173_v2  ;;  %v178_v38 = vadd.f32 %v177_v24, %v176_v10  ;;  %v185_v42 = vadd.f32 %v184_v26, %v183_v11  ;;  %v186_v18 = vsel %vm119_vm0, %v1212_v15, 0.0  ;;  %1922 = vst [vmem:[#allocation18_spill] sm:$0xff] %v1230_v47  ;;  %v1234_v2 = vld [vmem:[#allocation2 + $0x288] sm:$0xff]  ;;  %v1236_v10 = vld [vmem:[#allocation2 + $0x290] sm:$0xff] }
  0x27   :  { %v181_v27 = vsel %vm119_vm0, %v1220_v33, 0.0  ;;  %v188_v43 = vsel %vm119_vm0, %v1222_v34, 0.0  ;;  %v215_v44 = vadd.f32 %v214_v58, %v213_v16  ;;  %v221_v45 = vrot.slane %v220_v3, 2  ;;  %1923 = vst [vmem:[#allocation19_spill] sm:$0xff] %v1234_v2  ;;  %1924 = vst [vmem:[#allocation20_spill] sm:$0xff] %v1236_v10  ;;  %v1240_v34 = vld [vmem:[#allocation2 + $0x298] sm:$0xff] }
  0x28   :  { %v180_v48 = vadd.f32 %v179_v25, %v178_v38  ;;  %v187_v49 = vadd.f32 %v186_v18, %v185_v42  ;;  %v1232_v52 = vadd.f32 %v209_v12, %v208_v57  ;;  %v228_v53 = vrot.slane %v227_v13, 2  ;;  %1925 = vst [vmem:[#allocation21_spill] sm:$0xff] %v1240_v34  ;;  %v1242_v16 = vld [vmem:[#allocation2 + $0x2a0] sm:$0xff]  ;;  %v1248_v38 = vld [vmem:[#allocation2 + $0x2a8] sm:$0xff]  ;;  %v1250_v42 = vld [vmem:[#allocation2 + $0x2b0] sm:$0xff] }
  0x29   :  { %v190_v11 = vsel %vm119_vm0, %v1230_v47, 0.0  ;;  %v216_v24 = vrot.slane %v215_v44, 1  ;;  %v222_v26 = vadd.f32 %v221_v45, %v220_v3  ;;  %v233_v59 = vrot.slane %v232_v5, 4  ;;  %1926 = vst [vmem:[#allocation22_spill] sm:$0xff] %v1242_v16  ;;  %1927 = vst [vmem:[#allocation23_spill] sm:$0xff] %v1248_v38  ;;  %v1252_v18 = vld [vmem:[#allocation2 + $0x2b8] sm:$0xff] }
  0x2a   :  { %v182_v58 = vadd.f32 %v181_v27, %v180_v48  ;;  %v191_v57 = vsel %vm119_vm0, %v1236_v10, 0.0  ;;  %v197_v12 = vsel %vm119_vm0, %v1234_v2, 0.0  ;;  %v240_v25 = vrot.slane %v239_v7, 4  ;;  %1928 = vst [vmem:[#allocation24_spill] sm:$0xff] %v1250_v42  ;;  %1929 = vst [vmem:[#allocation25_spill] sm:$0xff] %v1252_v18 }
  0x2b   :  { %v189_v3 = vadd.f32 %v188_v43, %v187_v49  ;;  %v192_v45 = vadd.f32 %v191_v57, %v190_v11  ;;  %v193_v47 = vsel %vm119_vm0, %v1242_v16, 0.0  ;;  %v198_v27 = vsel %vm119_vm0, %v1240_v34, 0.0 }
  0x2c   :  { %v195_v48 = vsel %vm119_vm0, %v1250_v42, 0.0  ;;  %v199_v10 = vadd.f32 %v198_v27, %v197_v12  ;;  %v200_v2 = vsel %vm119_vm0, %v1248_v38, 0.0  ;;  %v202_v15 = vsel %vm119_vm0, %v1252_v18, 0.0 }
  0x2d   :  { %v194_v14 = vadd.f32 %v193_v47, %v192_v45  ;;  %v223_v1 = vrot.slane %v222_v26, 1  ;;  %v229_v43 = vadd.f32 %v228_v53, %v227_v13  ;;  %v234_v49 = vadd.f32 %v233_v59, %v232_v5 }
  0x2e   :  { %v201_v11 = vadd.f32 %v200_v2, %v199_v10  ;;  %v241_v57 = vadd.f32 %v240_v25, %v239_v7  ;;  %v246_v16 = vsel %vm119_vm0, %v168_v17, 0.0  ;;  %v253_v34 = vsel %vm119_vm0, %v175_v37, 0.0 }
  0x2f   :  { %v196_v33 = vadd.f32 %v195_v48, %v194_v14  ;;  %v217_v9 = vadd.f32 %v216_v24, %v215_v44  ;;  %v224_v42 = vadd.f32 %v223_v1, %v222_v26  ;;  %v235_v12 = vrot.slane %v234_v49, 2 }
  0x30   :  { %v203_v27 = vadd.f32 %v202_v15, %v201_v11  ;;  %v242_v8 = vrot.slane %v241_v57, 2  ;;  %v247_v38 = vrot.slane %v246_v16, 4  ;;  %v254_v0 = vrot.slane %v253_v34, 4 }
  0x31   :  { %v230_v46 = vrot.slane %v229_v43, 1  ;;  %v236_v18 = vadd.f32 %v235_v12, %v234_v49  ;;  %v260_v47 = vsel %vm119_vm0, %v182_v58, 0.0  ;;  %v267_v59 = vsel %vm119_vm0, %v189_v3, 0.0 }
  0x32   :  { %v243_v5 = vadd.f32 %v242_v8, %v241_v57  ;;  %v248_v7 = vadd.f32 %v247_v38, %v246_v16  ;;  %v255_v13 = vadd.f32 %v254_v0, %v253_v34  ;;  %v261_v17 = vrot.slane %v260_v47, 4 }
  0x33   :  { %v237_v53 = vrot.slane %v236_v18, 1  ;;  %v268_v37 = vrot.slane %v267_v59, 4  ;;  %v274_v14 = vsel %vm119_vm0, %v196_v33, 0.0  ;;  %v281_v1 = vsel %vm119_vm0, %v203_v27, 0.0 }
  0x34   :  { %v244_v15 = vrot.slane %v243_v5, 1  ;;  %v249_v44 = vrot.slane %v248_v7, 2  ;;  %v256_v2 = vrot.slane %v255_v13, 2  ;;  %v262_v10 = vadd.f32 %v261_v17, %v260_v47 }
  0x35   :  { %v231_v24 = vadd.f32 %v230_v46, %v229_v43  ;;  %v269_v26 = vadd.f32 %v268_v37, %v267_v59  ;;  %v275_v25 = vrot.slane %v274_v14, 4  ;;  %v282_v58 = vrot.slane %v281_v1, 4 }
  0x36   :  { %v238_v45 = vadd.f32 %v237_v53, %v236_v18  ;;  %v250_v3 = vadd.f32 %v249_v44, %v248_v7  ;;  %v257_v8 = vadd.f32 %v256_v2, %v255_v13  ;;  %v263_v16 = vrot.slane %v262_v10, 2 }
  0x37   :  { %v245_v0 = vadd.f32 %v244_v15, %v243_v5  ;;  %v270_v34 = vrot.slane %v269_v26, 2  ;;  %v276_v38 = vadd.f32 %v275_v25, %v274_v14  ;;  %v283_v48 = vadd.f32 %v282_v58, %v281_v1 }
  0x38   :  { %v251_v49 = vrot.slane %v250_v3, 1  ;;  %v258_v33 = vrot.slane %v257_v8, 1  ;;  %v264_v11 = vadd.f32 %v263_v16, %v262_v10  ;;  %v1271_v57 = vmul.f32 0.0625, %v1232_v52 }
  0x39   :  { %v271_v12 = vadd.f32 %v270_v34, %v269_v26  ;;  %v277_v27 = vrot.slane %v276_v38, 2  ;;  %v284_v46 = vrot.slane %v283_v48, 2  ;;  %v1273_v43 = vmul.f32 0.0625, %v217_v9 }
  0x3a   :  { %1930 = vst [vmem:[#allocation26_spill] sm:$0xff] %v1271_v57  ;;  %v252_v47 = vadd.f32 %v251_v49, %v250_v3  ;;  %v259_v18 = vadd.f32 %v258_v33, %v257_v8  ;;  %v265_v59 = vrot.slane %v264_v11, 1  ;;  %v1275_v7 = vmul.f32 0.0625, %v224_v42 }
  0x3b   :  { %1931 = vst [vmem:[#allocation27_spill] sm:$0xff] %v1273_v43  ;;  %v272_v5 = vrot.slane %v271_v12, 1  ;;  %v278_v13 = vadd.f32 %v277_v27, %v276_v38  ;;  %v285_v17 = vadd.f32 %v284_v46, %v283_v48  ;;  %v1277_v53 = vmul.f32 0.0625, %v231_v24  ;;  %v1597_v43 = vld [vmem:[#allocation2 + $0x2e0] sm:$0xff] }
  0x3c   :  { %1932 = vst [vmem:[#allocation28_spill] sm:$0xff] %v1275_v7  ;;  %v266_v37 = vadd.f32 %v265_v59, %v264_v11  ;;  %v1279_v14 = vmul.f32 0.0625, %v238_v45  ;;  %v1281_v52 = vmul.f32 0.0625, %v245_v0  ;;  %v1283_v1 = vmul.f32 0.0625, %v252_v47  ;;  %v1941_v59 = vld [vmem:[#allocation9_spill] sm:$0xff]  ;;  %1988 = vst [vmem:[#allocation48_spill] sm:$0xff] %v1597_v43 }
  0x3d   :  { %1933 = vst [vmem:[#allocation29_spill] sm:$0xff] %v1277_v53  ;;  %v273_v15 = vadd.f32 %v272_v5, %v271_v12  ;;  %v279_v9 = vrot.slane %v278_v13, 1  ;;  %v286_v44 = vrot.slane %v285_v17, 1  ;;  %v312_v2 = vadd.f32 %v1132_v60, %v1121_v54  ;;  %v1942_v5 = vld [vmem:[#allocation10_spill] sm:$0xff] }
  0x3e   :  { %1934 = vst [vmem:[#allocation30_spill] sm:$0xff] %v1279_v14  ;;  %1935 = vst [vmem:[#allocation31_spill] sm:$0xff] %v1281_v52  ;;  %v1287_v42 = vmul.f32 0.0625, %v259_v18  ;;  %v1289_v10 = vmul.f32 0.0625, %v266_v37  ;;  %v315_v24 = vsel %vm300_vm1, %v1082_v22, 0.0  ;;  %v316_v26 = vsel %vm300_vm1, %v1088_v28, 0.0 }
  0x3f   :  { %1936 = vst [vmem:[#allocation32_spill] sm:$0xff] %v1283_v1  ;;  %v280_v25 = vadd.f32 %v279_v9, %v278_v13  ;;  %v1295_v58 = vadd.f32 %v286_v44, %v285_v17  ;;  %v1297_v45 = vmul.f32 0.0625, %v273_v15  ;;  %v318_v3 = vsel %vm300_vm1, %v1092_v30, 0.0  ;;  %v1943_v37 = vld [vmem:[#allocation12_spill] sm:$0xff] }
  0x40   :  { %1937 = vst [vmem:[#allocation33_spill] sm:$0xff] %v1287_v42  ;;  %1938 = vst [vmem:[#allocation34_spill] sm:$0xff] %v1289_v10  ;;  %v1302_v54 = vadd.f32 %v1192_v51, %v312_v2  ;;  %v317_v60 = vadd.f32 %v316_v26, %v315_v24  ;;  %v322_v8 = vsel %vm300_vm1, %v1084_v23, 0.0  ;;  %v323_v22 = vsel %vm300_vm1, %v1090_v29, 0.0  ;;  %v1579_v14 = vld [vmem:[#allocation2 + $0x270] sm:$0xff] }
  0x41   :  { %1939 = vst [vmem:[#allocation35_spill] sm:$0xff] %v1297_v45  ;;  %v1308_v16 = vmul.f32 0.0625, %v280_v25  ;;  %v320_v28 = vsel %vm300_vm1, %v1101_v36, 0.0  ;;  %v324_v0 = vadd.f32 %v323_v22, %v322_v8  ;;  %v325_v34 = vsel %vm300_vm1, %v1099_v35, 0.0  ;;  %v1948_v8 = vld [vmem:[#allocation15_spill] sm:$0xff]  ;;  %1984 = vst [vmem:[#allocation44_spill] sm:$0xff] %v1579_v14 }
  0x42   :  { %v319_v30 = vadd.f32 %v318_v3, %v317_v60  ;;  %v327_v51 = vsel %vm300_vm1, %v1109_v41, 0.0  ;;  %v329_v38 = vsel %vm300_vm1, %v1119_v50, 0.0  ;;  %v330_v23 = vsel %vm300_vm1, %v1125_v56, 0.0  ;;  %v1947_v3 = vld [vmem:[#allocation13_spill] sm:$0xff]  ;;  %v1549_v45 = vld [vmem:[#allocation2 + $0x1e8] sm:$0xff] }
  0x43   :  { %1940 = vst [vmem:[#allocation36_spill] sm:$0xff] %v1308_v16  ;;  %v326_v29 = vadd.f32 %v325_v34, %v324_v0  ;;  %v331_v48 = vadd.f32 %v330_v23, %v329_v38  ;;  %v332_v49 = vsel %vm300_vm1, %v1136_v62, 0.0  ;;  %v334_v36 = vsel %vm300_vm1, %v1138_v63, 0.0  ;;  %v1949_v34 = vld [vmem:[#allocation17_spill] sm:$0xff] }
  0x44   :  { %v1324_v33 = vadd.f32 %v320_v28, %v319_v30  ;;  %v336_v35 = vsel %vm300_vm1, %v1123_v55, 0.0  ;;  %v337_v41 = vsel %vm300_vm1, %v1134_v61, 0.0  ;;  %v339_v50 = vsel %vm300_vm1, %v1144_v4, 0.0 }
  0x45   :  { %v1332_v56 = vadd.f32 %v327_v51, %v326_v29  ;;  %v333_v11 = vadd.f32 %v332_v49, %v331_v48  ;;  %v338_v12 = vadd.f32 %v337_v41, %v336_v35  ;;  %v341_v62 = vsel %vm300_vm1, %v1146_v6, 0.0  ;;  %v1950_v51 = vld [vmem:[#allocation18_spill] sm:$0xff]  ;;  %v1951_v29 = vld [vmem:[#allocation20_spill] sm:$0xff] }
  0x46   :  { %v343_v63 = vsel %vm300_vm1, %v1160_v19, 0.0  ;;  %v344_v27 = vsel %vm300_vm1, %v1164_v21, 0.0  ;;  %v346_v55 = vsel %vm300_vm1, %v1168_v32, 0.0  ;;  %v348_v61 = vsel %vm300_vm1, %v1178_v40, 0.0  ;;  %v1952_v49 = vld [vmem:[#allocation22_spill] sm:$0xff]  ;;  %v1953_v35 = vld [vmem:[#allocation24_spill] sm:$0xff] }
  0x47   :  { %v335_v4 = vadd.f32 %v334_v36, %v333_v11  ;;  %v340_v46 = vadd.f32 %v339_v50, %v338_v12  ;;  %v345_v47 = vadd.f32 %v344_v27, %v343_v63  ;;  %v350_v18 = vsel %vm300_vm1, %v1162_v20, 0.0  ;;  %v1944_v20 = vld [vmem:[#allocation14_spill] sm:$0xff]  ;;  %v1955_v27 = vld [vmem:[#allocation21_spill] sm:$0xff] }
  0x48   :  { %v351_v6 = vsel %vm300_vm1, %v1166_v31, 0.0  ;;  %v353_v19 = vsel %vm300_vm1, %v1176_v39, 0.0  ;;  %v355_v21 = vsel %vm300_vm1, %v1941_v59, 0.0  ;;  %v357_v32 = vsel %vm300_vm1, %v1942_v5, 0.0  ;;  %v1945_v31 = vld [vmem:[#allocation16_spill] sm:$0xff]  ;;  %v1946_v39 = vld [vmem:[#allocation11_spill] sm:$0xff] }
  0x49   :  { %v342_v13 = vadd.f32 %v341_v62, %v340_v46  ;;  %v347_v40 = vadd.f32 %v346_v55, %v345_v47  ;;  %v352_v17 = vadd.f32 %v351_v6, %v350_v18  ;;  %v358_v15 = vsel %vm300_vm1, %v1943_v37, 0.0  ;;  %v1954_v62 = vld [vmem:[#allocation19_spill] sm:$0xff]  ;;  %v1957_v47 = vld [vmem:[#allocation25_spill] sm:$0xff]  ;;  %v1958_v6 = vld [vmem:[#allocation8_spill] sm:$0xff] }
  0x4a   :  { %v359_v9 = vadd.f32 %v358_v15, %v357_v32  ;;  %v360_v44 = vsel %vm300_vm1, %v1944_v20, 0.0  ;;  %v362_v2 = vsel %vm300_vm1, %v1945_v31, 0.0  ;;  %v364_v24 = vsel %vm300_vm1, %v1946_v39, 0.0  ;;  %1976 = vst [vmem:[#allocation8_spill] sm:$0xff] %v1549_v45 }
  0x4b   :  { %v349_v26 = vadd.f32 %v348_v61, %v347_v40  ;;  %v354_v25 = vadd.f32 %v353_v19, %v352_v17  ;;  %v365_v60 = vsel %vm300_vm1, %v1947_v3, 0.0  ;;  %v367_v22 = vsel %vm300_vm1, %v1948_v8, 0.0  ;;  %v1956_v61 = vld [vmem:[#allocation23_spill] sm:$0xff] }
  0x4c   :  { %v361_v28 = vadd.f32 %v360_v44, %v359_v9  ;;  %v366_v0 = vadd.f32 %v365_v60, %v364_v24  ;;  %v369_v30 = vsel %vm300_vm1, %v1949_v34, 0.0  ;;  %v371_v38 = vsel %vm300_vm1, %v1950_v51, 0.0 }
  0x4d   :  { %v356_v23 = vadd.f32 %v355_v21, %v354_v25  ;;  %v372_v48 = vsel %vm300_vm1, %v1951_v29, 0.0  ;;  %v374_v36 = vsel %vm300_vm1, %v1952_v49, 0.0  ;;  %v376_v41 = vsel %vm300_vm1, %v1953_v35, 0.0 }
  0x4e   :  { %v1376_v50 = vadd.f32 %v362_v2, %v361_v28  ;;  %v368_v11 = vadd.f32 %v367_v22, %v366_v0  ;;  %v373_v12 = vadd.f32 %v372_v48, %v371_v38  ;;  %v378_v63 = vsel %vm300_vm1, %v1954_v62, 0.0 }
  0x4f   :  { %v379_v55 = vsel %vm300_vm1, %v1955_v27, 0.0  ;;  %v381_v46 = vsel %vm300_vm1, %v1956_v61, 0.0  ;;  %v383_v18 = vsel %vm300_vm1, %v1957_v47, 0.0  ;;  %v397_v19 = vrot.slane %v1958_v6, 4 }
  0x50   :  { %v1387_v59 = vadd.f32 %v369_v30, %v368_v11  ;;  %v375_v21 = vadd.f32 %v374_v36, %v373_v12  ;;  %v380_v5 = vadd.f32 %v379_v55, %v378_v63  ;;  %v398_v32 = vrot.slane %v1302_v54, 4 }
  0x51   :  { %v399_v40 = vrot.slane %v1324_v33, 4  ;;  %v400_v17 = vrot.slane %v1332_v56, 4  ;;  %v401_v37 = vrot.slane %v335_v4, 4  ;;  %v402_v15 = vrot.slane %v342_v13, 4 }
  0x52   :  { %v1393_v9 = vmul.f32 0.0625, %v1295_v58  ;;  %v1395_v20 = vadd.f32 %v376_v41, %v375_v21  ;;  %v382_v44 = vadd.f32 %v381_v46, %v380_v5  ;;  %v403_v31 = vrot.slane %v349_v26, 4 }
  0x53   :  { %v404_v2 = vrot.slane %v356_v23, 4  ;;  %v405_v39 = vrot.slane %v1376_v50, 4  ;;  %v421_v24 = vsel %vm119_vm0, %v397_v19, 0.0  ;;  %v428_v54 = vsel %vm119_vm0, %v398_v32, 0.0 }
  0x54   :  { %1959 = vst [vmem:[#allocation9_spill] sm:$0xff] %v1393_v9  ;;  %v1400_v25 = vadd.f32 %v383_v18, %v382_v44  ;;  %v406_v33 = vrot.slane %v1387_v59, 4  ;;  %v422_v56 = vrot.slane %v421_v24, 4  ;;  %v429_v4 = vrot.slane %v428_v54, 4 }
  0x55   :  { %v435_v58 = vsel %vm119_vm0, %v399_v40, 0.0  ;;  %v442_v13 = vsel %vm119_vm0, %v400_v17, 0.0  ;;  %v449_v3 = vsel %vm119_vm0, %v401_v37, 0.0  ;;  %v456_v26 = vsel %vm119_vm0, %v402_v15, 0.0 }
  0x56   :  { %v407_v60 = vrot.slane %v1395_v20, 4  ;;  %v423_v8 = vadd.f32 %v422_v56, %v421_v24  ;;  %v430_v22 = vadd.f32 %v429_v4, %v428_v54  ;;  %v436_v28 = vrot.slane %v435_v58, 4 }
  0x57   :  { %v443_v0 = vrot.slane %v442_v13, 4  ;;  %v450_v34 = vrot.slane %v449_v3, 4  ;;  %v457_v30 = vrot.slane %v456_v26, 4  ;;  %v463_v51 = vsel %vm119_vm0, %v403_v31, 0.0 }
  0x58   :  { %v424_v38 = vrot.slane %v423_v8, 2  ;;  %v431_v23 = vrot.slane %v430_v22, 2  ;;  %v437_v29 = vadd.f32 %v436_v28, %v435_v58  ;;  %v464_v48 = vrot.slane %v463_v51, 4 }
  0x59   :  { %v444_v49 = vadd.f32 %v443_v0, %v442_v13  ;;  %v451_v36 = vadd.f32 %v450_v34, %v449_v3  ;;  %v458_v35 = vadd.f32 %v457_v30, %v456_v26  ;;  %v470_v41 = vsel %vm119_vm0, %v404_v2, 0.0 }
  0x5a   :  { %v425_v50 = vadd.f32 %v424_v38, %v423_v8  ;;  %v432_v11 = vadd.f32 %v431_v23, %v430_v22  ;;  %v438_v12 = vrot.slane %v437_v29, 2  ;;  %v465_v62 = vadd.f32 %v464_v48, %v463_v51 }
  0x5b   :  { %v445_v63 = vrot.slane %v444_v49, 2  ;;  %v452_v27 = vrot.slane %v451_v36, 2  ;;  %v459_v55 = vrot.slane %v458_v35, 2  ;;  %v471_v61 = vrot.slane %v470_v41, 4 }
  0x5c   :  { %v426_v46 = vrot.slane %v425_v50, 1  ;;  %v433_v47 = vrot.slane %v432_v11, 1  ;;  %v439_v18 = vadd.f32 %v438_v12, %v437_v29  ;;  %v466_v6 = vrot.slane %v465_v62, 2 }
  0x5d   :  { %v446_v19 = vadd.f32 %v445_v63, %v444_v49  ;;  %v453_v59 = vadd.f32 %v452_v27, %v451_v36  ;;  %v460_v21 = vadd.f32 %v459_v55, %v458_v35  ;;  %v472_v5 = vadd.f32 %v471_v61, %v470_v41  ;;  %v1423_v35 = vld [vmem:[#allocation2 + $0x50] sm:$0xff] }
  0x5e   :  { %v408_v32 = vrot.slane %v1400_v25, 4  ;;  %v427_v40 = vadd.f32 %v426_v46, %v425_v50  ;;  %v440_v17 = vrot.slane %v439_v18, 1  ;;  %v467_v37 = vadd.f32 %v466_v6, %v465_v62  ;;  %v1427_v41 = vld [vmem:[#allocation2 + $0x70] sm:$0xff]  ;;  %v1437_v46 = vld [vmem:[#allocation2 + $0x48] sm:$0xff] }
  0x5f   :  { %v447_v15 = vrot.slane %v446_v19, 1  ;;  %v454_v20 = vrot.slane %v453_v59, 1  ;;  %v461_v44 = vrot.slane %v460_v21, 1  ;;  %v473_v31 = vrot.slane %v472_v5, 2 }
  0x60   :  { %v434_v2 = vadd.f32 %v433_v47, %v432_v11  ;;  %v468_v24 = vrot.slane %v467_v37, 1  ;;  %v477_v54 = vsel %vm119_vm0, %v405_v39, 0.0  ;;  %v484_v56 = vsel %vm119_vm0, %v406_v33, 0.0  ;;  %v1417_v33 = vld [vmem:[#allocation2 + $0x40] sm:$0xff]  ;;  %v1439_v47 = vld [vmem:[#allocation2 + $0x58] sm:$0xff] }
  0x61   :  { %v441_v4 = vadd.f32 %v440_v17, %v439_v18  ;;  %v448_v58 = vadd.f32 %v447_v15, %v446_v19  ;;  %v455_v13 = vadd.f32 %v454_v20, %v453_v59  ;;  %v474_v3 = vadd.f32 %v473_v31, %v472_v5  ;;  %v1441_v18 = vld [vmem:[#allocation2 + $0x68] sm:$0xff] }
  0x62   :  { %v462_v26 = vadd.f32 %v461_v44, %v460_v21  ;;  %v478_v8 = vrot.slane %v477_v54, 4  ;;  %v485_v25 = vrot.slane %v484_v56, 4  ;;  %v491_v22 = vsel %vm119_vm0, %v407_v60, 0.0  ;;  %v1425_v60 = vld [vmem:[#allocation2 + $0x60] sm:$0xff] }
  0x63   :  { %v469_v28 = vadd.f32 %v468_v24, %v467_v37  ;;  %v475_v0 = vrot.slane %v474_v3, 1  ;;  %v492_v34 = vrot.slane %v491_v22, 4  ;;  %v498_v30 = vsel %vm119_vm0, %v408_v32, 0.0  ;;  %v1451_v37 = vld [vmem:[#allocation2 + $0xc0] sm:$0xff] }
  0x64   :  { %v479_v51 = vadd.f32 %v478_v8, %v477_v54  ;;  %v486_v38 = vadd.f32 %v485_v25, %v484_v56  ;;  %v499_v23 = vrot.slane %v498_v30, 4  ;;  %v1415_v39 = vmul.f32 0.0625, %v427_v40 }
  0x65   :  { %v476_v29 = vadd.f32 %v475_v0, %v474_v3  ;;  %v493_v48 = vadd.f32 %v492_v34, %v491_v22  ;;  %v1419_v49 = vmul.f32 0.0625, %v434_v2  ;;  %v1421_v36 = vmul.f32 0.0625, %v441_v4  ;;  %v1453_v2 = vld [vmem:[#allocation2 + $0x78] sm:$0xff]  ;;  %v1465_v22 = vld [vmem:[#allocation2 + $0xc8] sm:$0xff] }
  0x66   :  { %1960 = vst [vmem:[#allocation10_spill] sm:$0xff] %v1415_v39  ;;  %v480_v50 = vrot.slane %v479_v51, 2  ;;  %v487_v11 = vrot.slane %v486_v38, 2  ;;  %v500_v12 = vadd.f32 %v499_v23, %v498_v30  ;;  %v1429_v62 = vmul.f32 0.0625, %v448_v58  ;;  %v1461_v58 = vld [vmem:[#allocation2 + $0xd0] sm:$0xff] }
  0x67   :  { %1961 = vst [vmem:[#allocation12_spill] sm:$0xff] %v1419_v49  ;;  %1962 = vst [vmem:[#allocation14_spill] sm:$0xff] %v1421_v36  ;;  %v494_v63 = vrot.slane %v493_v48, 2  ;;  %v1431_v27 = vmul.f32 0.0625, %v455_v13  ;;  %v1433_v55 = vmul.f32 0.0625, %v462_v26  ;;  %v1435_v61 = vmul.f32 0.0625, %v469_v28 }
  0x68   :  { %1963 = vst [vmem:[#allocation16_spill] sm:$0xff] %v1429_v62  ;;  %v481_v6 = vadd.f32 %v480_v50, %v479_v51  ;;  %v488_v19 = vadd.f32 %v487_v11, %v486_v38  ;;  %v501_v59 = vrot.slane %v500_v12, 2  ;;  %v517_v21 = vsel %vm119_vm0, %v1417_v33, 0.0  ;;  %v1463_v13 = vld [vmem:[#allocation2 + $0xe0] sm:$0xff]  ;;  %v1471_v51 = vld [vmem:[#allocation2 + $0xd8] sm:$0xff]  ;;  %v1473_v38 = vld [vmem:[#allocation2 + $0xe8] sm:$0xff] }
  0x69   :  { %1964 = vst [vmem:[#allocation11_spill] sm:$0xff] %v1431_v27  ;;  %1965 = vst [vmem:[#allocation13_spill] sm:$0xff] %v1433_v55  ;;  %v495_v5 = vadd.f32 %v494_v63, %v493_v48  ;;  %v518_v32 = vsel %vm119_vm0, %v1423_v35, 0.0  ;;  %v520_v40 = vsel %vm119_vm0, %v1425_v60, 0.0  ;;  %v522_v17 = vsel %vm119_vm0, %v1427_v41, 0.0  ;;  %v1475_v23 = vld [vmem:[#allocation2 + $0xf0] sm:$0xff] }
  0x6a   :  { %1966 = vst [vmem:[#allocation15_spill] sm:$0xff] %v1435_v61  ;;  %v482_v15 = vrot.slane %v481_v6, 1  ;;  %v489_v20 = vrot.slane %v488_v19, 1  ;;  %v502_v44 = vadd.f32 %v501_v59, %v500_v12  ;;  %v519_v31 = vadd.f32 %v518_v32, %v517_v21  ;;  %v1485_v63 = vld [vmem:[#allocation2 + $0x150] sm:$0xff]  ;;  %v1495_v32 = vld [vmem:[#allocation2 + $0x148] sm:$0xff] }
  0x6b   :  { %v496_v24 = vrot.slane %v495_v5, 1  ;;  %v524_v54 = vsel %vm119_vm0, %v1437_v46, 0.0  ;;  %v525_v56 = vsel %vm119_vm0, %v1439_v47, 0.0  ;;  %v527_v4 = vsel %vm119_vm0, %v1441_v18, 0.0  ;;  %v1577_v55 = vld [vmem:[#allocation2 + $0x268] sm:$0xff] }
  0x6c   :  { %v483_v3 = vadd.f32 %v482_v15, %v481_v6  ;;  %v490_v26 = vadd.f32 %v489_v20, %v488_v19  ;;  %v503_v8 = vrot.slane %v502_v44, 1  ;;  %v521_v25 = vadd.f32 %v520_v40, %v519_v31  ;;  %v1497_v40 = vld [vmem:[#allocation2 + $0x160] sm:$0xff]  ;;  %v1505_v31 = vld [vmem:[#allocation2 + $0x158] sm:$0xff]  ;;  %1983 = vst [vmem:[#allocation43_spill] sm:$0xff] %v1577_v55 }
  0x6d   :  { %v497_v28 = vadd.f32 %v496_v24, %v495_v5  ;;  %v1467_v0 = vmul.f32 0.0625, %v476_v29  ;;  %v526_v34 = vadd.f32 %v525_v56, %v524_v54  ;;  %v531_v30 = vsel %vm119_vm0, %v1451_v37, 0.0  ;;  %v1483_v29 = vld [vmem:[#allocation2 + $0x140] sm:$0xff]  ;;  %v1493_v5 = vld [vmem:[#allocation2 + $0xf8] sm:$0xff]  ;;  %v1507_v24 = vld [vmem:[#allocation2 + $0x168] sm:$0xff] }
  0x6e   :  { %v504_v48 = vadd.f32 %v503_v8, %v502_v44  ;;  %v1477_v50 = vmul.f32 0.0625, %v483_v3  ;;  %v1479_v11 = vmul.f32 0.0625, %v490_v26  ;;  %v529_v12 = vsel %vm119_vm0, %v1453_v2, 0.0  ;;  %v1509_v54 = vld [vmem:[#allocation2 + $0x170] sm:$0xff]  ;;  %v1519_v8 = vld [vmem:[#allocation2 + $0x1c0] sm:$0xff] }
  0x6f   :  { %1967 = vst [vmem:[#allocation17_spill] sm:$0xff] %v1467_v0  ;;  %v1487_v6 = vadd.f32 %v522_v17, %v521_v25  ;;  %v528_v19 = vadd.f32 %v527_v4, %v526_v34  ;;  %v532_v59 = vsel %vm119_vm0, %v1461_v58, 0.0  ;;  %v534_v21 = vsel %vm119_vm0, %v1463_v13, 0.0  ;;  %v1559_v0 = vld [vmem:[#allocation2 + $0x250] sm:$0xff] }
  0x70   :  { %1968 = vst [vmem:[#allocation18_spill] sm:$0xff] %v1477_v50  ;;  %1969 = vst [vmem:[#allocation20_spill] sm:$0xff] %v1479_v11  ;;  %v1499_v15 = vmul.f32 0.0625, %v497_v28  ;;  %v1501_v20 = vmul.f32 0.0625, %v504_v48  ;;  %v533_v44 = vadd.f32 %v532_v59, %v531_v30  ;;  %v538_v17 = vsel %vm119_vm0, %v1465_v22, 0.0  ;;  %v1525_v48 = vld [vmem:[#allocation2 + $0x178] sm:$0xff] }
  0x71   :  { %v1511_v56 = vadd.f32 %v529_v12, %v528_v19  ;;  %v536_v4 = vsel %vm119_vm0, %v1475_v23, 0.0  ;;  %v539_v3 = vsel %vm119_vm0, %v1471_v51, 0.0  ;;  %v541_v26 = vsel %vm119_vm0, %v1473_v38, 0.0  ;;  %v1527_v12 = vld [vmem:[#allocation2 + $0x1d0] sm:$0xff]  ;;  %v1529_v19 = vld [vmem:[#allocation2 + $0x1e0] sm:$0xff]  ;;  %1979 = vst [vmem:[#allocation39_spill] sm:$0xff] %v1559_v0 }
  0x72   :  { %1970 = vst [vmem:[#allocation22_spill] sm:$0xff] %v1499_v15  ;;  %1971 = vst [vmem:[#allocation24_spill] sm:$0xff] %v1501_v20  ;;  %v535_v25 = vadd.f32 %v534_v21, %v533_v44  ;;  %v540_v28 = vadd.f32 %v539_v3, %v538_v17  ;;  %v545_v34 = vsel %vm119_vm0, %v1483_v29, 0.0  ;;  %v546_v30 = vsel %vm119_vm0, %v1485_v63, 0.0  ;;  %v1537_v17 = vld [vmem:[#allocation2 + $0x1c8] sm:$0xff]  ;;  %v1539_v3 = vld [vmem:[#allocation2 + $0x1f0] sm:$0xff] }
  0x73   :  { %1972 = vst [vmem:[#allocation19_spill] sm:$0xff] %v1529_v19  ;;  %v543_v59 = vsel %vm119_vm0, %v1493_v5, 0.0  ;;  %v547_v9 = vadd.f32 %v546_v30, %v545_v34  ;;  %v548_v21 = vsel %vm119_vm0, %v1497_v40, 0.0  ;;  %v552_v44 = vsel %vm119_vm0, %v1495_v32, 0.0  ;;  %1973 = vst [vmem:[#allocation21_spill] sm:$0xff] %v1537_v17  ;;  %v1547_v30 = vld [vmem:[#allocation2 + $0x1d8] sm:$0xff] }
  0x74   :  { %1974 = vst [vmem:[#allocation23_spill] sm:$0xff] %v1539_v3  ;;  %v542_v20 = vadd.f32 %v541_v26, %v540_v28  ;;  %v550_v16 = vsel %vm119_vm0, %v1509_v54, 0.0  ;;  %v553_v15 = vsel %vm119_vm0, %v1505_v31, 0.0  ;;  %v555_v34 = vsel %vm119_vm0, %v1507_v24, 0.0  ;;  %1975 = vst [vmem:[#allocation25_spill] sm:$0xff] %v1547_v30  ;;  %v1551_v11 = vld [vmem:[#allocation2 + $0x240] sm:$0xff] }
  0x75   :  { %1977 = vst [vmem:[#allocation37_spill] sm:$0xff] %v1551_v11  ;;  %v1553_v10 = vadd.f32 %v536_v4, %v535_v25  ;;  %v549_v50 = vadd.f32 %v548_v21, %v547_v9  ;;  %v554_v42 = vadd.f32 %v553_v15, %v552_v44  ;;  %v559_v26 = vsel %vm119_vm0, %v1519_v8, 0.0  ;;  %v1557_v28 = vld [vmem:[#allocation2 + $0x1f8] sm:$0xff]  ;;  %v1567_v25 = vld [vmem:[#allocation2 + $0x248] sm:$0xff]  ;;  %v1569_v9 = vld [vmem:[#allocation2 + $0x260] sm:$0xff] }
  0x76   :  { %1978 = vst [vmem:[#allocation38_spill] sm:$0xff] %v1557_v28  ;;  %v544_v1 = vadd.f32 %v543_v59, %v542_v20  ;;  %v557_v61 = vsel %vm119_vm0, %v1525_v48, 0.0  ;;  %v560_v52 = vsel %vm119_vm0, %v1527_v12, 0.0  ;;  %v562_v4 = vsel %vm119_vm0, %v1529_v19, 0.0  ;;  %1980 = vst [vmem:[#allocation40_spill] sm:$0xff] %v1567_v25  ;;  %v1575_v59 = vld [vmem:[#allocation2 + $0x258] sm:$0xff] }
  0x77   :  { %1981 = vst [vmem:[#allocation41_spill] sm:$0xff] %v1569_v9  ;;  %v556_v15 = vadd.f32 %v555_v34, %v554_v42  ;;  %v561_v21 = vadd.f32 %v560_v52, %v559_v26  ;;  %v564_v44 = vsel %vm119_vm0, %v1539_v3, 0.0  ;;  %v566_v20 = vsel %vm119_vm0, %v1537_v17, 0.0  ;;  %1982 = vst [vmem:[#allocation42_spill] sm:$0xff] %v1575_v59  ;;  %v1587_v34 = vld [vmem:[#allocation2 + $0x2c0] sm:$0xff] }
  0x78   :  { %v551_v27 = vadd.f32 %v550_v16, %v549_v50  ;;  %v567_v53 = vsel %vm119_vm0, %v1547_v30, 0.0  ;;  %v569_v42 = vsel %vm119_vm0, %v1549_v45, 0.0  ;;  %v573_v52 = vsel %vm119_vm0, %v1551_v11, 0.0  ;;  %1985 = vst [vmem:[#allocation45_spill] sm:$0xff] %v1587_v34  ;;  %v1593_v16 = vld [vmem:[#allocation2 + $0x278] sm:$0xff]  ;;  %v1595_v50 = vld [vmem:[#allocation2 + $0x2d0] sm:$0xff] }
  0x79   :  { %v563_v26 = vadd.f32 %v562_v4, %v561_v21  ;;  %v568_v62 = vadd.f32 %v567_v53, %v566_v20  ;;  %v571_v7 = vsel %vm119_vm0, %v1557_v28, 0.0  ;;  %v574_v36 = vsel %vm119_vm0, %v1559_v0, 0.0  ;;  %1986 = vst [vmem:[#allocation46_spill] sm:$0xff] %v1593_v16  ;;  %1987 = vst [vmem:[#allocation47_spill] sm:$0xff] %v1595_v50  ;;  %v1603_v4 = vld [vmem:[#allocation2 + $0x2c8] sm:$0xff]  ;;  %v1605_v21 = vld [vmem:[#allocation2 + $0x2f0] sm:$0xff] }
  0x7a   :  { %v558_v49 = vadd.f32 %v557_v61, %v556_v15  ;;  %v575_v57 = vadd.f32 %v574_v36, %v573_v52  ;;  %v576_v39 = vsel %vm119_vm0, %v1569_v9, 0.0  ;;  %v580_v53 = vsel %vm119_vm0, %v1567_v25, 0.0  ;;  %1989 = vst [vmem:[#allocation49_spill] sm:$0xff] %v1603_v4  ;;  %1990 = vst [vmem:[#allocation50_spill] sm:$0xff] %v1605_v21  ;;  %v1613_v61 = vld [vmem:[#allocation2 + $0x2d8] sm:$0xff]  ;;  %v1615_v15 = vld [vmem:[#allocation2 + $0x2e8] sm:$0xff] }
  0x7b   :  { %v570_v20 = vadd.f32 %v569_v42, %v568_v62  ;;  %v578_v0 = vsel %vm119_vm0, %v1579_v14, 0.0  ;;  %v581_v11 = vsel %vm119_vm0, %v1575_v59, 0.0  ;;  %v583_v36 = vsel %vm119_vm0, %v1577_v55, 0.0  ;;  %1991 = vst [vmem:[#allocation51_spill] sm:$0xff] %v1613_v61  ;;  %1992 = vst [vmem:[#allocation52_spill] sm:$0xff] %v1615_v15  ;;  %v1619_v62 = vld [vmem:[#allocation2 + $0x2f8] sm:$0xff] }
  0x7c   :  { %v565_v52 = vadd.f32 %v564_v44, %v563_v26  ;;  %v577_v25 = vadd.f32 %v576_v39, %v575_v57  ;;  %v582_v9 = vadd.f32 %v581_v11, %v580_v53  ;;  %v587_v28 = vsel %vm119_vm0, %v1587_v34, 0.0  ;;  %1993 = vst [vmem:[#allocation53_spill] sm:$0xff] %v1619_v62 }
  0x7d   :  { %v572_v42 = vadd.f32 %v571_v7, %v570_v20  ;;  %v585_v14 = vsel %vm119_vm0, %v1593_v16, 0.0  ;;  %v588_v59 = vsel %vm119_vm0, %v1595_v50, 0.0  ;;  %v590_v55 = vsel %vm119_vm0, %v1597_v43, 0.0 }
  0x7e   :  { %v584_v45 = vadd.f32 %v583_v36, %v582_v9  ;;  %v589_v30 = vadd.f32 %v588_v59, %v587_v28  ;;  %v592_v57 = vsel %vm119_vm0, %v1605_v21, 0.0  ;;  %v594_v39 = vsel %vm119_vm0, %v1603_v4, 0.0 }
  0x7f   :  { %v579_v11 = vadd.f32 %v578_v0, %v577_v25  ;;  %v595_v7 = vsel %vm119_vm0, %v1613_v61, 0.0  ;;  %v597_v44 = vsel %vm119_vm0, %v1615_v15, 0.0  ;;  %v601_v26 = vsel %vm119_vm0, %v1487_v6, 0.0 }
  0x80   :  { %v591_v53 = vadd.f32 %v590_v55, %v589_v30  ;;  %v596_v20 = vadd.f32 %v595_v7, %v594_v39  ;;  %v599_v28 = vsel %vm119_vm0, %v1619_v62, 0.0  ;;  %v602_v9 = vrot.slane %v601_v26, 4 }
  0x81   :  { %v608_v59 = vsel %vm119_vm0, %v1511_v56, 0.0  ;;  %v615_v0 = vsel %vm119_vm0, %v1553_v10, 0.0  ;;  %v622_v25 = vsel %vm119_vm0, %v544_v1, 0.0  ;;  %v629_v36 = vsel %vm119_vm0, %v551_v27, 0.0 }
  0x82   :  { %v586_v15 = vadd.f32 %v585_v14, %v584_v45  ;;  %v593_v61 = vadd.f32 %v592_v57, %v591_v53  ;;  %v603_v4 = vadd.f32 %v602_v9, %v601_v26  ;;  %v609_v6 = vrot.slane %v608_v59, 4 }
  0x83   :  { %v616_v55 = vrot.slane %v615_v0, 4  ;;  %v623_v30 = vrot.slane %v622_v25, 4  ;;  %v630_v39 = vrot.slane %v629_v36, 4  ;;  %v636_v7 = vsel %vm119_vm0, %v558_v49, 0.0 }
  0x84   :  { %v598_v62 = vadd.f32 %v597_v44, %v596_v20  ;;  %v604_v21 = vrot.slane %v603_v4, 2  ;;  %v610_v43 = vadd.f32 %v609_v6, %v608_v59  ;;  %v637_v56 = vrot.slane %v636_v7, 4 }
  0x85   :  { %v617_v50 = vadd.f32 %v616_v55, %v615_v0  ;;  %v624_v34 = vadd.f32 %v623_v30, %v622_v25  ;;  %v631_v10 = vadd.f32 %v630_v39, %v629_v36  ;;  %v643_v1 = vsel %vm119_vm0, %v565_v52, 0.0 }
  0x86   :  { %v605_v16 = vadd.f32 %v604_v21, %v603_v4  ;;  %v611_v27 = vrot.slane %v610_v43, 2  ;;  %v638_v14 = vadd.f32 %v637_v56, %v636_v7  ;;  %v644_v45 = vrot.slane %v643_v1, 4 }
  0x87   :  { %v618_v57 = vrot.slane %v617_v50, 2  ;;  %v625_v26 = vrot.slane %v624_v34, 2  ;;  %v632_v53 = vrot.slane %v631_v10, 2  ;;  %v650_v9 = vsel %vm119_vm0, %v572_v42, 0.0 }
  0x88   :  { %v606_v17 = vrot.slane %v605_v16, 1  ;;  %v612_v49 = vadd.f32 %v611_v27, %v610_v43  ;;  %v639_v44 = vrot.slane %v638_v14, 2  ;;  %v645_v20 = vadd.f32 %v644_v45, %v643_v1 }
  0x89   :  { %v619_v59 = vadd.f32 %v618_v57, %v617_v50  ;;  %v626_v6 = vadd.f32 %v625_v26, %v624_v34  ;;  %v633_v0 = vadd.f32 %v632_v53, %v631_v10  ;;  %v651_v25 = vrot.slane %v650_v9, 4 }
  0x8a   :  { %v600_v36 = vadd.f32 %v599_v28, %v598_v62  ;;  %v613_v55 = vrot.slane %v612_v49, 1  ;;  %v640_v52 = vadd.f32 %v639_v44, %v638_v14  ;;  %v646_v4 = vrot.slane %v645_v20, 2 }
  0x8b   :  { %v620_v21 = vrot.slane %v619_v59, 1  ;;  %v627_v30 = vrot.slane %v626_v6, 1  ;;  %v634_v39 = vrot.slane %v633_v0, 1  ;;  %v652_v7 = vadd.f32 %v651_v25, %v650_v9 }
  0x8c   :  { %v607_v56 = vadd.f32 %v606_v17, %v605_v16  ;;  %v641_v3 = vrot.slane %v640_v52, 1  ;;  %v647_v19 = vadd.f32 %v646_v4, %v645_v20  ;;  %v657_v42 = vsel %vm119_vm0, %v579_v11, 0.0 }
  0x8d   :  { %v614_v43 = vadd.f32 %v613_v55, %v612_v49  ;;  %v621_v27 = vadd.f32 %v620_v21, %v619_v59  ;;  %v628_v1 = vadd.f32 %v627_v30, %v626_v6  ;;  %v653_v50 = vrot.slane %v652_v7, 2 }
  0x8e   :  { %v635_v34 = vadd.f32 %v634_v39, %v633_v0  ;;  %v648_v10 = vrot.slane %v647_v19, 1  ;;  %v658_v45 = vrot.slane %v657_v42, 4  ;;  %v664_v62 = vsel %vm119_vm0, %v586_v15, 0.0 }
  0x8f   :  { %v654_v28 = vadd.f32 %v653_v50, %v652_v7  ;;  %v665_v14 = vrot.slane %v664_v62, 4  ;;  %v671_v57 = vsel %vm119_vm0, %v593_v61, 0.0  ;;  %v678_v26 = vsel %vm119_vm0, %v600_v36, 0.0 }
  0x90   :  { %v642_v17 = vadd.f32 %v641_v3, %v640_v52  ;;  %v659_v16 = vadd.f32 %v658_v45, %v657_v42  ;;  %v672_v53 = vrot.slane %v671_v57, 4  ;;  %v679_v9 = vrot.slane %v678_v26, 4 }
  0x91   :  { %v649_v11 = vadd.f32 %v648_v10, %v647_v19  ;;  %v655_v49 = vrot.slane %v654_v28, 1  ;;  %v666_v44 = vadd.f32 %v665_v14, %v664_v62  ;;  %v1652_v20 = vmul.f32 0.0625, %v607_v56 }
  0x92   :  { %v660_v59 = vrot.slane %v659_v16, 2  ;;  %v673_v6 = vadd.f32 %v672_v53, %v671_v57  ;;  %v680_v0 = vadd.f32 %v679_v9, %v678_v26  ;;  %v1654_v25 = vmul.f32 0.0625, %v614_v43 }
  0x93   :  { %v656_v15 = vadd.f32 %v655_v49, %v654_v28  ;;  %v667_v55 = vrot.slane %v666_v44, 2  ;;  %v1656_v4 = vmul.f32 0.0625, %v621_v27  ;;  %v1658_v61 = vmul.f32 0.0625, %v628_v1 }
  0x94   :  { %v661_v3 = vadd.f32 %v660_v59, %v659_v16  ;;  %v674_v36 = vrot.slane %v673_v6, 2  ;;  %v681_v52 = vrot.slane %v680_v0, 2  ;;  %v1660_v21 = vmul.f32 0.0625, %v635_v34 }
  0x95   :  { %v668_v19 = vadd.f32 %v667_v55, %v666_v44  ;;  %v1662_v30 = vmul.f32 0.0625, %v642_v17  ;;  %v1664_v39 = vmul.f32 0.0625, %v649_v11  ;;  %v697_v7 = vsel %vm300_vm1, %v1417_v33, 0.0 }
  0x96   :  { %v662_v56 = vrot.slane %v661_v3, 1  ;;  %v675_v42 = vadd.f32 %v674_v36, %v673_v6  ;;  %v682_v43 = vadd.f32 %v681_v52, %v680_v0  ;;  %v698_v27 = vsel %vm300_vm1, %v1423_v35, 0.0 }
  0x97   :  { %v669_v1 = vrot.slane %v668_v19, 1  ;;  %v699_v50 = vadd.f32 %v698_v27, %v697_v7  ;;  %v700_v34 = vsel %vm300_vm1, %v1425_v60, 0.0  ;;  %v702_v10 = vsel %vm300_vm1, %v1427_v41, 0.0 }
  0x98   :  { %v663_v45 = vadd.f32 %v662_v56, %v661_v3  ;;  %v676_v62 = vrot.slane %v675_v42, 1  ;;  %v683_v28 = vrot.slane %v682_v43, 1  ;;  %v704_v33 = vsel %vm300_vm1, %v1437_v46, 0.0 }
  0x99   :  { %v670_v14 = vadd.f32 %v669_v1, %v668_v19  ;;  %v701_v57 = vadd.f32 %v700_v34, %v699_v50  ;;  %v705_v26 = vsel %vm300_vm1, %v1439_v47, 0.0  ;;  %v707_v35 = vsel %vm300_vm1, %v1441_v18, 0.0  ;;  %v1995_v1 = vld [vmem:[#allocation23_spill] sm:$0xff] }
  0x9a   :  { %v677_v17 = vadd.f32 %v676_v62, %v675_v42  ;;  %v1680_v16 = vadd.f32 %v683_v28, %v682_v43  ;;  %v1682_v60 = vmul.f32 0.0625, %v656_v15  ;;  %v706_v41 = vadd.f32 %v705_v26, %v704_v33  ;;  %v1994_v43 = vld [vmem:[#allocation19_spill] sm:$0xff]  ;;  %v1999_v33 = vld [vmem:[#allocation38_spill] sm:$0xff] }
  0x9b   :  { %v1684_v53 = vmul.f32 0.0625, %v663_v45  ;;  %v1686_v9 = vmul.f32 0.0625, %v670_v14  ;;  %v709_v46 = vsel %vm300_vm1, %v1453_v2, 0.0  ;;  %v711_v11 = vsel %vm300_vm1, %v1451_v37, 0.0  ;;  %v2000_v14 = vld [vmem:[#allocation37_spill] sm:$0xff] }
  0x9c   :  { %v1692_v47 = vmul.f32 0.0625, %v677_v17  ;;  %v1694_v49 = vadd.f32 %v702_v10, %v701_v57  ;;  %v708_v18 = vadd.f32 %v707_v35, %v706_v41  ;;  %v712_v44 = vsel %vm300_vm1, %v1461_v58, 0.0  ;;  %v1996_v10 = vld [vmem:[#allocation21_spill] sm:$0xff]  ;;  %v2001_v41 = vld [vmem:[#allocation39_spill] sm:$0xff] }
  0x9d   :  { %v713_v59 = vadd.f32 %v712_v44, %v711_v11  ;;  %v714_v6 = vsel %vm300_vm1, %v1463_v13, 0.0  ;;  %v716_v0 = vsel %vm300_vm1, %v1475_v23, 0.0  ;;  %v718_v2 = vsel %vm300_vm1, %v1465_v22, 0.0 }
  0x9e   :  { %v1704_v15 = vadd.f32 %v709_v46, %v708_v18  ;;  %v719_v37 = vsel %vm300_vm1, %v1471_v51, 0.0  ;;  %v721_v55 = vsel %vm300_vm1, %v1473_v38, 0.0  ;;  %v723_v58 = vsel %vm300_vm1, %v1493_v5, 0.0  ;;  %v2002_v18 = vld [vmem:[#allocation41_spill] sm:$0xff] }
  0x9f   :  { %v715_v3 = vadd.f32 %v714_v6, %v713_v59  ;;  %v720_v36 = vadd.f32 %v719_v37, %v718_v2  ;;  %v725_v13 = vsel %vm300_vm1, %v1483_v29, 0.0  ;;  %v726_v23 = vsel %vm300_vm1, %v1485_v63, 0.0  ;;  %v2003_v59 = vld [vmem:[#allocation44_spill] sm:$0xff] }
  0xa0   :  { %v727_v22 = vadd.f32 %v726_v23, %v725_v13  ;;  %v728_v52 = vsel %vm300_vm1, %v1497_v40, 0.0  ;;  %v730_v51 = vsel %vm300_vm1, %v1509_v54, 0.0  ;;  %v732_v38 = vsel %vm300_vm1, %v1495_v32, 0.0 }
  0xa1   :  { %v1722_v19 = vadd.f32 %v716_v0, %v715_v3  ;;  %v722_v5 = vadd.f32 %v721_v55, %v720_v36  ;;  %v733_v7 = vsel %vm300_vm1, %v1505_v31, 0.0  ;;  %v735_v29 = vsel %vm300_vm1, %v1507_v24, 0.0  ;;  %v2004_v0 = vld [vmem:[#allocation40_spill] sm:$0xff]  ;;  %v2006_v36 = vld [vmem:[#allocation43_spill] sm:$0xff] }
  0xa2   :  { %v729_v63 = vadd.f32 %v728_v52, %v727_v22  ;;  %v734_v56 = vadd.f32 %v733_v7, %v732_v38  ;;  %v737_v40 = vsel %vm300_vm1, %v1525_v48, 0.0  ;;  %v739_v54 = vsel %vm300_vm1, %v1519_v8, 0.0  ;;  %v1997_v48 = vld [vmem:[#allocation25_spill] sm:$0xff]  ;;  %v1998_v8 = vld [vmem:[#allocation8_spill] sm:$0xff]  ;;  %v2007_v52 = vld [vmem:[#allocation46_spill] sm:$0xff] }
  0xa3   :  { %v724_v42 = vadd.f32 %v723_v58, %v722_v5  ;;  %v740_v32 = vsel %vm300_vm1, %v1527_v12, 0.0  ;;  %v742_v27 = vsel %vm300_vm1, %v1994_v43, 0.0  ;;  %v744_v31 = vsel %vm300_vm1, %v1995_v1, 0.0  ;;  %v2005_v58 = vld [vmem:[#allocation42_spill] sm:$0xff]  ;;  %v2008_v38 = vld [vmem:[#allocation45_spill] sm:$0xff] }
  0xa4   :  { %v731_v50 = vadd.f32 %v730_v51, %v729_v63  ;;  %v736_v24 = vadd.f32 %v735_v29, %v734_v56  ;;  %v741_v34 = vadd.f32 %v740_v32, %v739_v54  ;;  %v746_v45 = vsel %vm300_vm1, %v1996_v10, 0.0  ;;  %v2009_v29 = vld [vmem:[#allocation47_spill] sm:$0xff]  ;;  %v2010_v56 = vld [vmem:[#allocation48_spill] sm:$0xff]  ;;  %v2011_v54 = vld [vmem:[#allocation50_spill] sm:$0xff] }
  0xa5   :  { %v747_v62 = vsel %vm300_vm1, %v1997_v48, 0.0  ;;  %v749_v28 = vsel %vm300_vm1, %v1998_v8, 0.0  ;;  %v751_v12 = vsel %vm300_vm1, %v1999_v33, 0.0  ;;  %v753_v57 = vsel %vm300_vm1, %v2000_v14, 0.0 }
  0xa6   :  { %v738_v26 = vadd.f32 %v737_v40, %v736_v24  ;;  %v743_v35 = vadd.f32 %v742_v27, %v741_v34  ;;  %v748_v17 = vadd.f32 %v747_v62, %v746_v45  ;;  %v754_v46 = vsel %vm300_vm1, %v2001_v41, 0.0  ;;  %v2013_v34 = vld [vmem:[#allocation51_spill] sm:$0xff]  ;;  %v2014_v45 = vld [vmem:[#allocation52_spill] sm:$0xff]  ;;  %v2015_v62 = vld [vmem:[#allocation53_spill] sm:$0xff] }
  0xa7   :  { %v755_v11 = vadd.f32 %v754_v46, %v753_v57  ;;  %v756_v44 = vsel %vm300_vm1, %v2002_v18, 0.0  ;;  %v758_v6 = vsel %vm300_vm1, %v2003_v59, 0.0  ;;  %v760_v2 = vsel %vm300_vm1, %v2004_v0, 0.0 }
  0xa8   :  { %v745_v37 = vadd.f32 %v744_v31, %v743_v35  ;;  %v750_v55 = vadd.f32 %v749_v28, %v748_v17  ;;  %v761_v3 = vsel %vm300_vm1, %v2005_v58, 0.0  ;;  %v763_v13 = vsel %vm300_vm1, %v2006_v36, 0.0  ;;  %v2012_v31 = vld [vmem:[#allocation49_spill] sm:$0xff] }
  0xa9   :  { %v757_v23 = vadd.f32 %v756_v44, %v755_v11  ;;  %v762_v22 = vadd.f32 %v761_v3, %v760_v2  ;;  %v765_v51 = vsel %vm300_vm1, %v2007_v52, 0.0  ;;  %v767_v5 = vsel %vm300_vm1, %v2008_v38, 0.0 }
  0xaa   :  { %v752_v7 = vadd.f32 %v751_v12, %v750_v55  ;;  %v768_v63 = vsel %vm300_vm1, %v2009_v29, 0.0  ;;  %v770_v40 = vsel %vm300_vm1, %v2010_v56, 0.0  ;;  %v772_v32 = vsel %vm300_vm1, %v2011_v54, 0.0 }
  0xab   :  { %v1770_v43 = vadd.f32 %v758_v6, %v757_v23  ;;  %v764_v27 = vadd.f32 %v763_v13, %v762_v22  ;;  %v769_v1 = vadd.f32 %v768_v63, %v767_v5  ;;  %v774_v24 = vsel %vm300_vm1, %v2012_v31, 0.0 }
  0xac   :  { %v775_v10 = vsel %vm300_vm1, %v2013_v34, 0.0  ;;  %v777_v48 = vsel %vm300_vm1, %v2014_v45, 0.0  ;;  %v779_v8 = vsel %vm300_vm1, %v2015_v62, 0.0  ;;  %v793_v28 = vrot.slane %v1694_v49, 4 }
  0xad   :  { %v1781_v33 = vadd.f32 %v765_v51, %v764_v27  ;;  %v771_v12 = vadd.f32 %v770_v40, %v769_v1  ;;  %v776_v14 = vadd.f32 %v775_v10, %v774_v24  ;;  %v794_v57 = vrot.slane %v1704_v15, 4 }
  0xae   :  { %v795_v35 = vrot.slane %v1722_v19, 4  ;;  %v796_v17 = vrot.slane %v724_v42, 4  ;;  %v797_v41 = vrot.slane %v731_v50, 4  ;;  %v798_v46 = vrot.slane %v738_v26, 4 }
  0xaf   :  { %v1786_v11 = vmul.f32 0.0625, %v1680_v16  ;;  %v1788_v18 = vadd.f32 %v772_v32, %v771_v12  ;;  %v778_v44 = vadd.f32 %v777_v48, %v776_v14  ;;  %v799_v59 = vrot.slane %v745_v37, 4 }
  0xb0   :  { %v800_v6 = vrot.slane %v752_v7, 4  ;;  %v801_v49 = vrot.slane %v1770_v43, 4  ;;  %v817_v0 = vsel %vm119_vm0, %v793_v28, 0.0  ;;  %v824_v2 = vsel %vm119_vm0, %v794_v57, 0.0 }
  0xb1   :  { %v1793_v15 = vadd.f32 %v779_v8, %v778_v44  ;;  %v802_v19 = vrot.slane %v1781_v33, 4  ;;  %v818_v42 = vrot.slane %v817_v0, 4  ;;  %v825_v50 = vrot.slane %v824_v2, 4 }
  0xb2   :  { %v831_v16 = vsel %vm119_vm0, %v795_v35, 0.0  ;;  %v838_v26 = vsel %vm119_vm0, %v796_v17, 0.0  ;;  %v845_v55 = vsel %vm119_vm0, %v797_v41, 0.0  ;;  %v852_v37 = vsel %vm119_vm0, %v798_v46, 0.0 }
  0xb3   :  { %v803_v58 = vrot.slane %v1788_v18, 4  ;;  %v819_v3 = vadd.f32 %v818_v42, %v817_v0  ;;  %v826_v36 = vadd.f32 %v825_v50, %v824_v2  ;;  %v832_v13 = vrot.slane %v831_v16, 4 }
  0xb4   :  { %v839_v23 = vrot.slane %v838_v26, 4  ;;  %v846_v22 = vrot.slane %v845_v55, 4  ;;  %v853_v52 = vrot.slane %v852_v37, 4  ;;  %v859_v51 = vsel %vm119_vm0, %v799_v59, 0.0 }
  0xb5   :  { %v820_v38 = vrot.slane %v819_v3, 2  ;;  %v827_v5 = vrot.slane %v826_v36, 2  ;;  %v833_v7 = vadd.f32 %v832_v13, %v831_v16  ;;  %v860_v29 = vrot.slane %v859_v51, 4 }
  0xb6   :  { %v840_v63 = vadd.f32 %v839_v23, %v838_v26  ;;  %v847_v56 = vadd.f32 %v846_v22, %v845_v55  ;;  %v854_v40 = vadd.f32 %v853_v52, %v852_v37  ;;  %v866_v54 = vsel %vm119_vm0, %v800_v6, 0.0 }
  0xb7   :  { %v821_v32 = vadd.f32 %v820_v38, %v819_v3  ;;  %v828_v43 = vadd.f32 %v827_v5, %v826_v36  ;;  %v834_v27 = vrot.slane %v833_v7, 2  ;;  %v861_v1 = vadd.f32 %v860_v29, %v859_v51 }
  0xb8   :  { %v841_v31 = vrot.slane %v840_v63, 2  ;;  %v848_v24 = vrot.slane %v847_v56, 2  ;;  %v855_v34 = vrot.slane %v854_v40, 2  ;;  %v867_v10 = vrot.slane %v866_v54, 4 }
  0xb9   :  { %v822_v45 = vrot.slane %v821_v32, 1  ;;  %v829_v48 = vrot.slane %v828_v43, 1  ;;  %v835_v62 = vadd.f32 %v834_v27, %v833_v7  ;;  %v862_v8 = vrot.slane %v861_v1, 2 }
  0xba   :  { %v842_v28 = vadd.f32 %v841_v31, %v840_v63  ;;  %v849_v33 = vadd.f32 %v848_v24, %v847_v56  ;;  %v856_v12 = vadd.f32 %v855_v34, %v854_v40  ;;  %v868_v14 = vadd.f32 %v867_v10, %v866_v54 }
  0xbb   :  { %v804_v57 = vrot.slane %v1793_v15, 4  ;;  %v823_v35 = vadd.f32 %v822_v45, %v821_v32  ;;  %v836_v17 = vrot.slane %v835_v62, 1  ;;  %v863_v41 = vadd.f32 %v862_v8, %v861_v1 }
  0xbc   :  { %v843_v46 = vrot.slane %v842_v28, 1  ;;  %v850_v18 = vrot.slane %v849_v33, 1  ;;  %v857_v44 = vrot.slane %v856_v12, 1  ;;  %v869_v59 = vrot.slane %v868_v14, 2 }
  0xbd   :  { %v830_v6 = vadd.f32 %v829_v48, %v828_v43  ;;  %v864_v0 = vrot.slane %v863_v41, 1  ;;  %v873_v2 = vsel %vm119_vm0, %v801_v49, 0.0  ;;  %v880_v42 = vsel %vm119_vm0, %v802_v19, 0.0  ;;  %v2016_v48 = vld [vmem:[#allocation10_spill] sm:$0xff] }
  0xbe   :  { %v837_v50 = vadd.f32 %v836_v17, %v835_v62  ;;  %v844_v16 = vadd.f32 %v843_v46, %v842_v28  ;;  %v851_v26 = vadd.f32 %v850_v18, %v849_v33  ;;  %v870_v55 = vadd.f32 %v869_v59, %v868_v14  ;;  %v2017_v62 = vld [vmem:[#allocation26_spill] sm:$0xff]  ;;  %v2018_v28 = vld [vmem:[#allocation12_spill] sm:$0xff]  ;;  %v2019_v33 = vld [vmem:[#allocation27_spill] sm:$0xff] }
  0xbf   :  { %v858_v37 = vadd.f32 %v857_v44, %v856_v12  ;;  %v874_v3 = vrot.slane %v873_v2, 4  ;;  %v881_v15 = vrot.slane %v880_v42, 4  ;;  %v887_v36 = vsel %vm119_vm0, %v803_v58, 0.0  ;;  %v2020_v17 = vld [vmem:[#allocation14_spill] sm:$0xff]  ;;  %v2022_v44 = vld [vmem:[#allocation16_spill] sm:$0xff]  ;;  %v2023_v59 = vld [vmem:[#allocation29_spill] sm:$0xff] }
  0xc0   :  { %v865_v13 = vadd.f32 %v864_v0, %v863_v41  ;;  %v871_v23 = vrot.slane %v870_v55, 1  ;;  %v888_v22 = vrot.slane %v887_v36, 4  ;;  %v894_v52 = vsel %vm119_vm0, %v804_v57, 0.0  ;;  %v2021_v41 = vld [vmem:[#allocation28_spill] sm:$0xff]  ;;  %v2024_v0 = vld [vmem:[#allocation11_spill] sm:$0xff] }
  0xc1   :  { %v875_v51 = vadd.f32 %v874_v3, %v873_v2  ;;  %v882_v38 = vadd.f32 %v881_v15, %v880_v42  ;;  %v895_v5 = vrot.slane %v894_v52, 4  ;;  %v901_v49 = vmul.f32 0.0625, %v823_v35  ;;  %v2025_v2 = vld [vmem:[#allocation30_spill] sm:$0xff]  ;;  %v2028_v15 = vld [vmem:[#allocation15_spill] sm:$0xff] }
  0xc2   :  { %v872_v7 = vadd.f32 %v871_v23, %v870_v55  ;;  %v889_v19 = vadd.f32 %v888_v22, %v887_v36  ;;  %v902_v29 = vmul.f32 0.0625, %v830_v6  ;;  %v903_v63 = vmul.f32 0.0625, %v837_v50  ;;  %v2026_v50 = vld [vmem:[#allocation13_spill] sm:$0xff]  ;;  %v2029_v36 = vld [vmem:[#allocation32_spill] sm:$0xff] }
  0xc3   :  { %v876_v56 = vrot.slane %v875_v51, 2  ;;  %v883_v40 = vrot.slane %v882_v38, 2  ;;  %v896_v54 = vadd.f32 %v895_v5, %v894_v52  ;;  %v904_v32 = vmul.f32 0.0625, %v844_v16  ;;  %v2027_v16 = vld [vmem:[#allocation31_spill] sm:$0xff]  ;;  %v2030_v22 = vld [vmem:[#allocation17_spill] sm:$0xff]  ;;  %v2033_v5 = vld [vmem:[#allocation34_spill] sm:$0xff] }
  0xc4   :  { %v890_v43 = vrot.slane %v889_v19, 2  ;;  %v905_v27 = vmul.f32 0.0625, %v851_v26  ;;  %v906_v58 = vmul.f32 0.0625, %v858_v37  ;;  %v907_v1 = vmul.f32 0.0625, %v865_v13  ;;  %v2031_v52 = vld [vmem:[#allocation33_spill] sm:$0xff] }
  0xc5   :  { %v877_v31 = vadd.f32 %v876_v56, %v875_v51  ;;  %v884_v24 = vadd.f32 %v883_v40, %v882_v38  ;;  %v897_v34 = vrot.slane %v896_v54, 2  ;;  %vm913_vm2 = vcmask 1040384   ;;  %v2032_v38 = vld [vmem:[#allocation18_spill] sm:$0xff]  ;;  %v2035_v56 = vld [vmem:[#allocation35_spill] sm:$0xff] }
  0xc6   :  { %v891_v10 = vadd.f32 %v890_v43, %v889_v19  ;;  %v908_v45 = vmul.f32 0.0625, %v872_v7  ;;  %v914_v8 = vsel %vm913_vm2, %v2017_v62, %v2016_v48  ;;  %v915_v12 = vsel %vm913_vm2, %v2019_v33, %v2018_v28  ;;  %v2034_v19 = vld [vmem:[#allocation20_spill] sm:$0xff]  ;;  %v2039_v28 = vld [vmem:[#allocation9_spill] sm:$0xff] }
  0xc7   :  { %v878_v14 = vrot.slane %v877_v31, 1  ;;  %v885_v57 = vrot.slane %v884_v24, 1  ;;  %v898_v35 = vadd.f32 %v897_v34, %v896_v54  ;;  %v916_v46 = vsel %vm913_vm2, %v2021_v41, %v2020_v17  ;;  %v2037_v34 = vld [vmem:[#allocation36_spill] sm:$0xff] }
  0xc8   :  { %v892_v18 = vrot.slane %v891_v10, 1  ;;  %v917_v6 = vsel %vm913_vm2, %v2023_v59, %v2022_v44  ;;  %v918_v42 = vsel %vm913_vm2, %v2025_v2, %v2024_v0  ;;  %v919_v26 = vsel %vm913_vm2, %v2027_v16, %v2026_v50  ;;  %v2038_v62 = vld [vmem:[#allocation24_spill] sm:$0xff] }
  0xc9   :  { %v879_v55 = vadd.f32 %v878_v14, %v877_v31  ;;  %v886_v37 = vadd.f32 %v885_v57, %v884_v24  ;;  %v899_v3 = vrot.slane %v898_v35, 1  ;;  %v920_v13 = vsel %vm913_vm2, %v2029_v36, %v2028_v15  ;;  %v2036_v24 = vld [vmem:[#allocation22_spill] sm:$0xff] }
  0xca   :  { %v893_v23 = vadd.f32 %v892_v18, %v891_v10  ;;  %v921_v51 = vsel %vm913_vm2, %v2031_v52, %v2030_v22  ;;  %v922_v7 = vsel %vm913_vm2, %v2033_v5, %v2032_v38  ;;  %v923_v40 = vsel %vm913_vm2, %v2035_v56, %v2034_v19 }
  0xcb   :  { %v900_v54 = vadd.f32 %v899_v3, %v898_v35  ;;  %v909_v43 = vmul.f32 0.0625, %v879_v55  ;;  %v910_v31 = vmul.f32 0.0625, %v886_v37  ;;  %v924_v48 = vsel %vm913_vm2, %v2037_v34, %v2036_v24 }
  0xcc   :  { %v911_v10 = vmul.f32 0.0625, %v893_v23  ;;  %v925_v33 = vsel %vm913_vm2, %v2039_v28, %v2038_v62  ;;  %vm926_vm3 = vcmask 1041408   ;;  %vm939_vm4 = vcmask 1042432  }
  0xcd   :  { %v912_v14 = vmul.f32 0.0625, %v900_v54  ;;  %v927_v57 = vsel %vm926_vm3, %v914_v8, %v1652_v20  ;;  %v928_v17 = vsel %vm926_vm3, %v915_v12, %v1654_v25  ;;  %v929_v35 = vsel %vm926_vm3, %v916_v46, %v1656_v4 }
  0xce   :  { %v930_v41 = vsel %vm926_vm3, %v917_v6, %v1658_v61  ;;  %v931_v18 = vsel %vm926_vm3, %v918_v42, %v1660_v21  ;;  %v932_v44 = vsel %vm926_vm3, %v919_v26, %v1662_v30  ;;  %v933_v59 = vsel %vm926_vm3, %v920_v13, %v1664_v39 }
  0xcf   :  { %v934_v0 = vsel %vm926_vm3, %v921_v51, %v1682_v60  ;;  %v935_v2 = vsel %vm926_vm3, %v922_v7, %v1684_v53  ;;  %v936_v50 = vsel %vm926_vm3, %v923_v40, %v1686_v9  ;;  %v937_v20 = vsel %vm926_vm3, %v924_v48, %v1692_v47 }
  0xd0   :  { %v938_v25 = vsel %vm926_vm3, %v925_v33, %v1786_v11  ;;  %v940_v4 = vsel %vm939_vm4, %v927_v57, %v901_v49  ;;  %v941_v61 = vsel %vm939_vm4, %v928_v17, %v902_v29  ;;  %v942_v21 = vsel %vm939_vm4, %v929_v35, %v903_v63 }
  0xd1   :  { %v943_v30 = vsel %vm939_vm4, %v930_v41, %v904_v32  ;;  %v944_v39 = vsel %vm939_vm4, %v931_v18, %v905_v27  ;;  %v945_v60 = vsel %vm939_vm4, %v932_v44, %v906_v58  ;;  %v946_v53 = vsel %vm939_vm4, %v933_v59, %v907_v1 }
  0xd2   :  { %v947_v9 = vsel %vm939_vm4, %v934_v0, %v908_v45  ;;  %v948_v47 = vsel %vm939_vm4, %v935_v2, %v909_v43  ;;  %v949_v11 = vsel %vm939_vm4, %v936_v50, %v910_v31  ;;  %v950_v49 = vsel %vm939_vm4, %v937_v20, %v911_v10 }
  0xd3   :  { %v951_v29 = vsel %vm939_vm4, %v938_v25, %v912_v14  ;;  %v964_v63 = vcombine.low %v940_v4, %v941_v61  ;;  %v965_v8 = vcombine.low %v942_v21, %v943_v30  ;;  %v966_v12 = vcombine.low %v944_v39, %v945_v60 }
  0xd4   :  { %v967_v32 = vcombine.low %v946_v53, %v947_v9  ;;  %v968_v27 = vcombine.low %v948_v47, %v949_v11  ;;  %v969_v46 = vcombine.low %v950_v49, %v951_v29 }
  0xd5   :  { %976 = vst [vmem:[#allocation5] sm:$0xff] %v964_v63  ;;  %977 = vst [vmem:[#allocation5 + $0x8] sm:$0xff] %v965_v8 }
  0xd6   :  { %978 = vst [vmem:[#allocation5 + $0x10] sm:$0xff] %v966_v12  ;;  %979 = vst [vmem:[#allocation5 + $0x18] sm:$0xff] %v967_v32 }
  0xd7   :  { %980 = vst [vmem:[#allocation5 + $0x20] sm:$0xff] %v968_v27  ;;  %981 = vst [vmem:[#allocation5 + $0x28] sm:$0xff] %v969_v46 }
  0xd8   :  { %1036 = shalt.err (!%p1033_p9)
}
  0xd9   :  { %s1053_s15 = smov 128   ;;  %s1054_s16 = smov 8  }
  0xda   :  { %993 = dma.vmem_to_hbm [thread:$0]  %s988_s13, 768, %s1872_s1, [#allocation4], %s1053_s15, %s1053_s15, %s1054_s16  }
  0xdb   :  { %1047 = dma.done.wait [#allocation4], 768  }
  0xdc   :  { %1048 = vsyncadd [#allocation4], 4294966528 }
  0xdd   :  { %997 = vsyncpa [#allocation3], 1 }
  0xde   :  { %998 = vsyncpa [#allocation4], 1 }

</bundles_post_ra>
